<compile_context>
chip_gen: v7x
topology: tpu7x:2x2x1
jax: 0.10.0
libtpu: 0.0.40
codegen_flags: <defaults>
</compile_context>

<pallas_src>
from functools import partial

import jax
import jax.numpy as jnp
import numpy as np
from jax.experimental import pallas as pl
from jax.experimental.pallas import tpu as pltpu


# -----------------------------------------------------------------------------
# Pallas kernel: one grid step = `bb` batch elements, all heads + both 1x1 convs.
# -----------------------------------------------------------------------------
def _linear_attention_kernel(x_ref, wqkv_ref, wo_ref, bo_ref, out_ref, out_all_ref, *,
                             heads, dim_head, compute_dtype):
    # x_ref       : (BB, C, N)      activations in their NATIVE dtype (VPU-cast below)
    # wqkv_ref    : (3*hidden, C)   fused to_qkv 1x1-conv weight (compute_dtype)
    # wo_ref      : (C, hidden)     to_out 1x1-conv weight (compute_dtype)
    # bo_ref      : (C, 1)          to_out bias (fp32)
    # out_ref     : (BB, C, N)
    # out_all_ref : (hidden, N)     fp32 VMEM scratch for the stacked head outputs
    hidden = heads * dim_head
    bb, C, N = x_ref.shape

    wqkv = wqkv_ref[...]                                  # (3*hidden, C)
    wo = wo_ref[...]                                      # (C, hidden)
    # Hoisted: JAX does not CSE broadcast_in_dim, so do the (C,1)->(C,N) broadcast once.
    bias_bc = jnp.broadcast_to(bo_ref[...].astype(jnp.float32), (C, N))

    for b in range(bb):                                   # static; bb > 1 only when collapsed
        # In-kernel cast: activation HBM traffic stays at native width.
        x = x_ref[b].astype(compute_dtype)                # (C, N)

        # Fused q/k/v projection: one wide MXU matmul instead of 3*heads tiny ones.
        qkv = jnp.dot(wqkv, x, preferred_element_type=jnp.float32)   # (3*hidden, N) fp32
        q_all = qkv[0 * hidden:1 * hidden, :]             # (hidden, N)
        k_all = qkv[1 * hidden:2 * hidden, :]             # (hidden, N)
        v_all = qkv[2 * hidden:3 * hidden, :]             # (hidden, N)

        # Row-wise softmax over the token (lane) axis == PyTorch softmax(dim=-1) over n.
        # Normalization is deferred to the (hidden, hidden) context below.
        k_all = k_all - jnp.max(k_all, axis=1, keepdims=True)
        k_exp = jnp.exp(k_all)                                        # fp32 (EUP)
        inv_sum = pl.reciprocal(jnp.sum(k_exp, axis=1, keepdims=True),
                                approx=False)                         # (hidden, 1), exact

        # Fused context: ONE (hidden, N) x (N, hidden) matmul; the per-head (dh, dh)
        # contexts are its diagonal blocks.  ctx_all[d, e] = sum_n exp(k)[d, n] v[e, n].
        ctx_all = jax.lax.dot_general(
            k_exp.astype(compute_dtype), v_all.astype(compute_dtype),
            (((1,), (1,)), ((), ())),
            preferred_element_type=jnp.float32) * inv_sum             # (hidden, hidden) fp32

        # Per-head second matmul; results go straight into the VMEM scratch (no concat,
        # bounded live ranges).  Kept per-head (K = dh) to minimize MXU pushes on v5e.
        for h in range(heads):                                        # static unrolled
            lo = h * dim_head
            ctx_h = ctx_all[lo:lo + dim_head, lo:lo + dim_head]       # (dh, dh)
            q_h = q_all[lo:lo + dim_head, :]                          # (dh, N)
            # out_h[e, n] = sum_d ctx[d, e] * q[d, n]
            out_all_ref[lo:lo + dim_head, :] = jax.lax.dot_general(
                ctx_h.astype(compute_dtype), q_h.astype(compute_dtype),
                (((0,), (0,)), ((), ())),
                preferred_element_type=jnp.float32)                   # (dh, N) fp32

        # Fused to_out 1x1 conv: one (C, hidden) @ (hidden, N) matmul (K = 128) + bias.
        y = jnp.dot(wo, out_all_ref[...].astype(compute_dtype),
                    preferred_element_type=jnp.float32) + bias_bc     # (C, N) fp32
        out_ref[b] = y.astype(out_ref.dtype)


# -----------------------------------------------------------------------------
# Wrapper: NCHW -> (B, C, N) (pure reshape, no cast), pallas_call, reshape back.
# -----------------------------------------------------------------------------
def linear_attention(x, w_qkv, w_out, b_out, heads, dim_head,
                     compute_dtype=jnp.bfloat16, out_dtype=None):
    """x: (B, C, H, W); w_qkv: (3*heads*dim_head, C); w_out: (C, heads*dim_head);
    b_out: (C,).

    compute_dtype sets the MXU matmul *operand* dtype (default bf16: fp32 MXU matmuls
    are emulated on v5e/v6e/v7x); softmax and every accumulator stay fp32.
    out_dtype defaults to x.dtype; pass jnp.bfloat16 when the consumer accepts it to
    halve output HBM traffic (this kernel is HBM-bound at production sizes)."""
    B, C, H, W = x.shape
    N = H * W
    hidden = heads * dim_head
    out_dtype = np.dtype(x.dtype if out_dtype is None else out_dtype)
    compute_dtype = np.dtype(compute_dtype)

    # Channel-major token layout: straight reshape, NO transpose and NO activation cast.
    x_cn = x.reshape(B, C, N)
    w_qkv_c = w_qkv.astype(compute_dtype)                 # tiny, one-time weight casts
    w_out_c = w_out.astype(compute_dtype)
    b_out_c = b_out.reshape(C, 1).astype(jnp.float32)     # bias stays fp32

    # Per-grid-step VMEM estimate: double-buffered I/O blocks PLUS the fp32 qkv, k_exp,
    # context and head-output-scratch intermediates, plus the resident weights.
    def per_step_vmem_bytes(bb):
        io = 2 * bb * C * N * (np.dtype(x.dtype).itemsize + out_dtype.itemsize)
        qkv_f32 = 3 * hidden * N * 4
        kexp_f32 = hidden * N * 4
        scratch_f32 = hidden * N * 4
        ctx_f32 = hidden * hidden * 4
        wts = (3 * hidden * C + C * hidden) * compute_dtype.itemsize + C * 4
        return io + qkv_f32 + kexp_f32 + scratch_f32 + ctx_f32 + wts

    # Batch collapsing amortizes the ~0.35us/step grid overhead at tiny sizes, but never
    # below TWO grid steps so v7x's second TensorCore ("parallel" sharding) is not idled;
    # v5e/v6e are single-TC and unaffected.  Budget is conservative for v7x's 64 MiB VMEM.
    VMEM_SOFT_BUDGET = 32 << 20
    bb = 1
    if B >= 4 and B % 2 == 0 and per_step_vmem_bytes(B // 2) <= VMEM_SOFT_BUDGET:
        bb = B // 2                                       # grid stays at exactly 2 steps
    # TODO(synk): for production N (e.g. 64*64) add an N-tile grid axis with an online
    # running-max/sum softmax (fp32 scratch) so per-step blocks fit v7x's 64 MiB VMEM.

    vmem_limit = int(min(max(2 * per_step_vmem_bytes(bb), 24 << 20), 40 << 20))

    kernel = partial(_linear_attention_kernel, heads=heads, dim_head=dim_head,
                     compute_dtype=compute_dtype)

    # NOTE(perf): at production C, mark the three constant weight/bias specs with
    # pipeline_mode=pl.Buffered(1) to drop their unused double-buffer copy (~0.65 MiB at
    # C=320); omitted here since it is noise at these sizes.
    out_cn = pl.pallas_call(
        kernel,
        out_shape=jax.ShapeDtypeStruct((B, C, N), out_dtype),
        grid_spec=pltpu.PrefetchScalarGridSpec(
            num_scalar_prefetch=0,
            grid=(B // bb,),
            in_specs=[
                pl.BlockSpec((bb, C, N), lambda b: (b, 0, 0)),
                pl.BlockSpec((3 * hidden, C), lambda b: (0, 0)),
                pl.BlockSpec((C, hidden), lambda b: (0, 0)),
                pl.BlockSpec((C, 1), lambda b: (0, 0)),
            ],
            out_specs=pl.BlockSpec((bb, C, N), lambda b: (b, 0, 0)),
            scratch_shapes=[pltpu.VMEM((hidden, N), jnp.float32)],
        ),
        compiler_params=pltpu.CompilerParams(
            dimension_semantics=("parallel",),
            vmem_limit_bytes=vmem_limit,
        ),
    )(x_cn, w_qkv_c, w_out_c, b_out_c)

    return out_cn.reshape(B, C, H, W)


# -----------------------------------------------------------------------------
# Pure-JAX reference mirroring the PyTorch module exactly.
# -----------------------------------------------------------------------------
def reference(x, w_qkv, w_out, b_out, heads, dim_head):
    B, C, H, W = x.shape
    hidden = heads * dim_head
    qkv = jnp.einsum('bchw,oc->bohw', x, w_qkv)               # to_qkv 1x1 conv
    qkv = qkv.reshape(B, 3, heads, dim_head, H * W)
    q, k, v = qkv[:, 0], qkv[:, 1], qkv[:, 2]
    k = jax.nn.softmax(k, axis=-1)
    context = jnp.einsum('bhdn,bhen->bhde', k, v)
    out = jnp.einsum('bhde,bhdn->bhen', context, q)
    out = out.reshape(B, hidden, H, W)
    out = jnp.einsum('bchw,oc->bohw', out, w_out) + b_out[None, :, None, None]
    return out


if __name__ == "__main__":
    # Module hyperparameters (consistent with LinearAttention defaults)
    dim, heads, dim_head = 4, 4, 32
    hidden = heads * dim_head                                  # 128
    B, H, W = 2, 16, 16

    key = jax.random.PRNGKey(0)
    kx, kqkv, kwo, kbo = jax.random.split(key, 4)

    # Deterministic synthetic parameters (1x1-conv weights squeezed to 2D)
    x = jax.random.normal(kx, (B, dim, H, W), dtype=jnp.float32)
    w_qkv = jax.random.normal(kqkv, (3 * hidden, dim), dtype=jnp.float32) * 0.1
    w_out = jax.random.normal(kwo, (dim, hidden), dtype=jnp.float32) * 0.1
    b_out = jax.random.normal(kbo, (dim,), dtype=jnp.float32) * 0.1

    ref = reference(x, w_qkv, w_out, b_out, heads, dim_head)

    # Strict fp32 MXU-operand path (tight tolerance).
    out_f32 = jax.block_until_ready(
        linear_attention(x, w_qkv, w_out, b_out, heads, dim_head,
                         compute_dtype=jnp.float32))
    np.testing.assert_allclose(np.asarray(out_f32), np.asarray(ref),
                               rtol=1e-3, atol=1e-3)

    # Default bf16 MXU-operand path; softmax/accumulation/reciprocal stay fp32, so only
    # bf16 operand rounding remains -> looser tolerance.
    out_bf16 = jax.block_until_ready(
        linear_attention(x, w_qkv, w_out, b_out, heads, dim_head))
    np.testing.assert_allclose(np.asarray(out_bf16), np.asarray(ref),
                               rtol=3e-2, atol=3e-2)

    print("KERNEL_OK")
</pallas_src>

<mosaic_0001>
module attributes {stable_mosaic.version = 11 : i64} {
  func.func @_linear_attention_kernel(%arg0: i32, %arg1: memref<1x4x256xf32, #tpu.memory_space<vmem>>, %arg2: memref<384x4xf32, #tpu.memory_space<vmem>>, %arg3: memref<4x128xf32, #tpu.memory_space<vmem>>, %arg4: memref<4x1xf32, #tpu.memory_space<vmem>>, %arg5: memref<1x4x256xf32, #tpu.memory_space<vmem>>, %arg6: memref<128x256xf32, #tpu.memory_space<vmem>>) attributes {dimension_semantics = [#tpu.dimension_semantics<parallel>], iteration_bounds = array<i64: 2>, scalar_prefetch = 0 : i64, scratch_operands = 1 : i64, tpu.core_type = #tpu.core_type<tc>, window_params = [{transform_indices = @transform_0, window_bounds = array<i64: 1, 4, 256>}, {pipeline_mode = #tpu.pipeline_mode<synchronous>, transform_indices = @transform_1, window_bounds = array<i64: 384, 4>}, {pipeline_mode = #tpu.pipeline_mode<synchronous>, transform_indices = @transform_2, window_bounds = array<i64: 4, 128>}, {pipeline_mode = #tpu.pipeline_mode<synchronous>, transform_indices = @transform_3, window_bounds = array<i64: 4, 1>}, {transform_indices = @transform_4, window_bounds = array<i64: 1, 4, 256>}]} {
    %c0 = arith.constant 0 : index
    %c0_0 = arith.constant 0 : index
    %0 = vector.load %arg2[%c0, %c0_0] : memref<384x4xf32, #tpu.memory_space<vmem>>, vector<384x4xf32>
    %c0_1 = arith.constant 0 : index
    %c0_2 = arith.constant 0 : index
    %1 = vector.load %arg3[%c0_1, %c0_2] : memref<4x128xf32, #tpu.memory_space<vmem>>, vector<4x128xf32>
    %c0_3 = arith.constant 0 : index
    %c0_4 = arith.constant 0 : index
    %2 = vector.load %arg4[%c0_3, %c0_4] : memref<4x1xf32, #tpu.memory_space<vmem>>, vector<4x1xf32>
    %3 = vector.shape_cast %2 : vector<4x1xf32> to vector<4x1xf32>
    %4 = vector.broadcast %3 : vector<4x1xf32> to vector<4x256xf32>
    %c0_5 = arith.constant 0 : index
    %c0_6 = arith.constant 0 : index
    %c0_7 = arith.constant 0 : index
    %5 = vector.load %arg1[%c0_5, %c0_6, %c0_7] : memref<1x4x256xf32, #tpu.memory_space<vmem>>, vector<1x4x256xf32>
    %6 = vector.shape_cast %5 : vector<1x4x256xf32> to vector<4x256xf32>
    %cst = arith.constant dense<0.000000e+00> : vector<384x256xf32>
    %7 = tpu.matmul %0, %6, %cst {dimension_numbers = #tpu.dot_dimension_numbers<[1], [0], [0], [1], [0, 0, 1, 1], [], []>} : vector<384x4xf32>, vector<4x256xf32>, vector<384x256xf32> -> vector<384x256xf32>
    %8 = vector.extract_strided_slice %7 {offsets = [0, 0], sizes = [128, 256], strides = [1, 1]} : vector<384x256xf32> to vector<128x256xf32>
    %9 = vector.extract_strided_slice %7 {offsets = [128, 0], sizes = [128, 256], strides = [1, 1]} : vector<384x256xf32> to vector<128x256xf32>
    %10 = vector.extract_strided_slice %7 {offsets = [256, 0], sizes = [128, 256], strides = [1, 1]} : vector<384x256xf32> to vector<128x256xf32>
    %cst_8 = arith.constant dense<0xFF800000> : vector<128xf32>
    %11 = vector.multi_reduction <maximumf>, %9, %cst_8 [1] : vector<128x256xf32> to vector<128xf32>
    %12 = vector.shape_cast %11 : vector<128xf32> to vector<128x1xf32>
    %13 = vector.broadcast %12 : vector<128x1xf32> to vector<128x256xf32>
    %14 = arith.subf %9, %13 : vector<128x256xf32>
    %15 = math.exp %14 : vector<128x256xf32>
    %cst_9 = arith.constant dense<0.000000e+00> : vector<128xf32>
    %16 = vector.multi_reduction <add>, %15, %cst_9 [1] : vector<128x256xf32> to vector<128xf32>
    %17 = vector.shape_cast %16 : vector<128xf32> to vector<128x1xf32>
    %18 = tpu.reciprocal %17 : vector<128x1xf32> -> vector<128x1xf32>
    %cst_10 = arith.constant dense<0.000000e+00> : vector<128x128xf32>
    %19 = tpu.matmul %15, %10, %cst_10 {dimension_numbers = #tpu.dot_dimension_numbers<[1], [1], [0], [0], [0, 0, 1, 0], [], []>} : vector<128x256xf32>, vector<128x256xf32>, vector<128x128xf32> -> vector<128x128xf32>
    %20 = vector.broadcast %18 : vector<128x1xf32> to vector<128x128xf32>
    %21 = arith.mulf %19, %20 : vector<128x128xf32>
    %22 = vector.extract_strided_slice %21 {offsets = [0, 0], sizes = [32, 32], strides = [1, 1]} : vector<128x128xf32> to vector<32x32xf32>
    %23 = vector.extract_strided_slice %8 {offsets = [0, 0], sizes = [32, 256], strides = [1, 1]} : vector<128x256xf32> to vector<32x256xf32>
    %cst_11 = arith.constant dense<0.000000e+00> : vector<32x256xf32>
    %24 = tpu.matmul %22, %23, %cst_11 {dimension_numbers = #tpu.dot_dimension_numbers<[0], [0], [1], [1], [0, 1, 1, 1], [], []>} : vector<32x32xf32>, vector<32x256xf32>, vector<32x256xf32> -> vector<32x256xf32>
    %c0_12 = arith.constant 0 : index
    %c0_13 = arith.constant 0 : index
    %25 = vector.load %arg6[%c0_12, %c0_13] : memref<128x256xf32, #tpu.memory_space<vmem>>, vector<32x256xf32>
    tpu.vector_store %arg6[%c0_12, %c0_13], %24 {strides = array<i32>} : memref<128x256xf32, #tpu.memory_space<vmem>>, vector<32x256xf32>,
    %26 = vector.extract_strided_slice %21 {offsets = [32, 32], sizes = [32, 32], strides = [1, 1]} : vector<128x128xf32> to vector<32x32xf32>
    %27 = vector.extract_strided_slice %8 {offsets = [32, 0], sizes = [32, 256], strides = [1, 1]} : vector<128x256xf32> to vector<32x256xf32>
    %cst_14 = arith.constant dense<0.000000e+00> : vector<32x256xf32>
    %28 = tpu.matmul %26, %27, %cst_14 {dimension_numbers = #tpu.dot_dimension_numbers<[0], [0], [1], [1], [0, 1, 1, 1], [], []>} : vector<32x32xf32>, vector<32x256xf32>, vector<32x256xf32> -> vector<32x256xf32>
    %c32 = arith.constant 32 : index
    %c0_15 = arith.constant 0 : index
    %29 = vector.load %arg6[%c32, %c0_15] : memref<128x256xf32, #tpu.memory_space<vmem>>, vector<32x256xf32>
    tpu.vector_store %arg6[%c32, %c0_15], %28 {strides = array<i32>} : memref<128x256xf32, #tpu.memory_space<vmem>>, vector<32x256xf32>,
    %30 = vector.extract_strided_slice %21 {offsets = [64, 64], sizes = [32, 32], strides = [1, 1]} : vector<128x128xf32> to vector<32x32xf32>
    %31 = vector.extract_strided_slice %8 {offsets = [64, 0], sizes = [32, 256], strides = [1, 1]} : vector<128x256xf32> to vector<32x256xf32>
    %cst_16 = arith.constant dense<0.000000e+00> : vector<32x256xf32>
    %32 = tpu.matmul %30, %31, %cst_16 {dimension_numbers = #tpu.dot_dimension_numbers<[0], [0], [1], [1], [0, 1, 1, 1], [], []>} : vector<32x32xf32>, vector<32x256xf32>, vector<32x256xf32> -> vector<32x256xf32>
    %c64 = arith.constant 64 : index
    %c0_17 = arith.constant 0 : index
    %33 = vector.load %arg6[%c64, %c0_17] : memref<128x256xf32, #tpu.memory_space<vmem>>, vector<32x256xf32>
    tpu.vector_store %arg6[%c64, %c0_17], %32 {strides = array<i32>} : memref<128x256xf32, #tpu.memory_space<vmem>>, vector<32x256xf32>,
    %34 = vector.extract_strided_slice %21 {offsets = [96, 96], sizes = [32, 32], strides = [1, 1]} : vector<128x128xf32> to vector<32x32xf32>
    %35 = vector.extract_strided_slice %8 {offsets = [96, 0], sizes = [32, 256], strides = [1, 1]} : vector<128x256xf32> to vector<32x256xf32>
    %cst_18 = arith.constant dense<0.000000e+00> : vector<32x256xf32>
    %36 = tpu.matmul %34, %35, %cst_18 {dimension_numbers = #tpu.dot_dimension_numbers<[0], [0], [1], [1], [0, 1, 1, 1], [], []>} : vector<32x32xf32>, vector<32x256xf32>, vector<32x256xf32> -> vector<32x256xf32>
    %c96 = arith.constant 96 : index
    %c0_19 = arith.constant 0 : index
    %37 = vector.load %arg6[%c96, %c0_19] : memref<128x256xf32, #tpu.memory_space<vmem>>, vector<32x256xf32>
    tpu.vector_store %arg6[%c96, %c0_19], %36 {strides = array<i32>} : memref<128x256xf32, #tpu.memory_space<vmem>>, vector<32x256xf32>,
    %c0_20 = arith.constant 0 : index
    %c0_21 = arith.constant 0 : index
    %38 = vector.load %arg6[%c0_20, %c0_21] : memref<128x256xf32, #tpu.memory_space<vmem>>, vector<128x256xf32>
    %cst_22 = arith.constant dense<0.000000e+00> : vector<4x256xf32>
    %39 = tpu.matmul %1, %38, %cst_22 {dimension_numbers = #tpu.dot_dimension_numbers<[1], [0], [0], [1], [0, 0, 1, 1], [], []>} : vector<4x128xf32>, vector<128x256xf32>, vector<4x256xf32> -> vector<4x256xf32>
    %40 = arith.addf %39, %4 : vector<4x256xf32>
    %c0_23 = arith.constant 0 : index
    %c0_24 = arith.constant 0 : index
    %c0_25 = arith.constant 0 : index
    %41 = vector.load %arg5[%c0_23, %c0_24, %c0_25] : memref<1x4x256xf32, #tpu.memory_space<vmem>>, vector<1x4x256xf32>
    %42 = vector.shape_cast %41 : vector<1x4x256xf32> to vector<4x256xf32>
    %43 = vector.shape_cast %40 : vector<4x256xf32> to vector<1x4x256xf32>
    tpu.vector_store %arg5[%c0_23, %c0_24, %c0_25], %43 {strides = array<i32>} : memref<1x4x256xf32, #tpu.memory_space<vmem>>, vector<1x4x256xf32>,
    return
  }
  func.func @transform_0(%arg0: i32) -> (i32, i32, i32) {
    %c0_i32 = arith.constant 0 : i32
    %c0_i32_0 = arith.constant 0 : i32
    %c0_i32_1 = arith.constant 0 : i32
    return %arg0, %c0_i32, %c0_i32_0 : i32, i32, i32
  }
  func.func @transform_1(%arg0: i32) -> (i32, i32) {
    %c0_i32 = arith.constant 0 : i32
    %c0_i32_0 = arith.constant 0 : i32
    %c0_i32_1 = arith.constant 0 : i32
    return %c0_i32, %c0_i32_0 : i32, i32
  }
  func.func @transform_2(%arg0: i32) -> (i32, i32) {
    %c0_i32 = arith.constant 0 : i32
    %c0_i32_0 = arith.constant 0 : i32
    %c0_i32_1 = arith.constant 0 : i32
    return %c0_i32, %c0_i32_0 : i32, i32
  }
  func.func @transform_3(%arg0: i32) -> (i32, i32) {
    %c0_i32 = arith.constant 0 : i32
    %c0_i32_0 = arith.constant 0 : i32
    %c0_i32_1 = arith.constant 0 : i32
    return %c0_i32, %c0_i32_0 : i32, i32
  }
  func.func @transform_4(%arg0: i32) -> (i32, i32, i32) {
    %c0_i32 = arith.constant 0 : i32
    %c0_i32_0 = arith.constant 0 : i32
    %c0_i32_1 = arith.constant 0 : i32
    return %arg0, %c0_i32, %c0_i32_0 : i32, i32, i32
  }
}

</mosaic_0001>

<bundles_post_ra>
// kernel: tpu_custom_call.1
= control target key start
LH: loop header
LB: loop body
LE: loop exit
PB: predicated region body
PF: predicated region fallthrough
CT: control target
= control target key end

     0   :  { %9 = vsyncpa [#allocation4], 0  ;;  %s3009_s0 = inlined_call_operand.vmem [shape: f32[2,4,256], index: 0, kind: input, shape index: {}]   ;;  %s3010_s1 = inlined_call_operand.vmem [shape: f32[384,4], index: 1, kind: input, shape index: {}]   ;;  %s3011_s2 = inlined_call_operand.vmem [shape: f32[4,128], index: 2, kind: input, shape index: {}]   ;;  %s3012_s3 = inlined_call_operand.vmem [shape: f32[4,1], index: 3, kind: input, shape index: {}]   ;;  %s3013_s4 = inlined_call_operand.hbm [shape: f32[2,4,256], index: 4, kind: output, shape index: {}]  }
   0x1   :  { %11 = vsyncpa [#allocation4 + $0x1], 0  ;;  %s2334_s15 = smov 0   ;;  %s2336_s16 = smov 0  }
   0x2   :  { %s2338_s17 = smov 0   ;;  %s2340_s18 = smov 0  }
   0x3 LB: > { %s2355_s19 = sadd.s32 4294967295, %s2301_s18   ;;  %s1921_s20 = sadd.s32 4294967294, %s2301_s18   ;;  %s2301_s18 = sphi %s2340_s18, %s3092_s18   ;;  %s2297_s17 = sphi %s2338_s17, %s3091_s17   ;;  %s2293_s16 = sphi %s2336_s16, %s3090_s16   ;;  %s2289_s15 = sphi %s2334_s15, %s3089_s15  }
   0x4   : > { %s2359_s21 = sadd.s32 1, %s2301_s18   ;;  %s113_s22 = sadd.s32 1, %s2297_s17 }
   0x5   : > { %s110_s23 = ssub.s32 %s2301_s18, %s2359_s21  ;;  %p123_p0 = scmp.ne.s32.totalorder %s2297_s17, %s2293_s16 }
   0x6   : > { %p111_p1 = scmp.eq.s32.totalorder %s110_s23, 0  ;;  %p124_p2 = scmp.eq.s32.totalorder %s2355_s19, 1 }
   0x7   : > { %p129_p3 = scmp.ne.s32.totalorder %s2293_s16, %s2289_s15  ;;  %p130_p4 = scmp.eq.s32.totalorder %s1921_s20, 1 }
   0x8   : > { %s2370_s24 = scalar_select %p111_p1, %s2297_s17, %s113_s22  }
   0x9   : > { %p2372_p5 = por %p124_p2, %p123_p0  ;;  %p2376_p6 = por %p130_p4, %p129_p3 }
   0xa   : > { %p1924_p7 = scmp.ge.s32.totalorder %s2301_s18, 1  ;;  %p165_p8 = scmp.lt.s32.totalorder %s2301_s18, 3 }
   0xc   : > { %p166_p9 = pnand %p1924_p7, %p165_p8 }
   0xe   : > { %169 = sbr.rel (%p166_p9) target bundleno = 1438 (0x59e), region = 36 }
  0x15   : > { %p191_p10 = scmp.lt.s32.totalorder %s2355_s19, 1  ;;  %v3014_v0 = vmov 0.0   ;;  %vm399_vm0 = vcmask 1043456   ;;  %v196_v3 = vld [vmem:[%s3010_s1] sm:$0xff]  ;;  %vm254_vm1 = vcmask 31744   ;;  %v197_v4 = vld [vmem:[%s3010_s1 + $0x8] sm:$0xff] }
  0x16   : > { %468 = vmatprep.mubr.f32.mxu0 %v3014_v0  ;;  %v198_v5 = vld [vmem:[%s3010_s1 + $0x10] sm:$0xff]  ;;  %v199_v6 = vld [vmem:[%s3010_s1 + $0x18] sm:$0xff]  ;;  %v200_v7 = vld [vmem:[%s3010_s1 + $0x20] sm:$0xff]  ;;  %s2304_s23 = smov 96   ;;  %vm1158_vm2 = vcmask 261120   ;;  %s188_s7 = sand.u32 1, %s2293_s16  }
  0x17   : > { %s192_s27 = scalar_select %p191_p10, %s2355_s19, 1  ;;  %v201_v8 = vld [vmem:[%s3010_s1 + $0x28] sm:$0xff]  ;;  %v202_v9 = vld [vmem:[%s3010_s1 + $0x30] sm:$0xff]  ;;  %v203_v10 = vld [vmem:[%s3010_s1 + $0x38] sm:$0xff] }
  0x18   : > { %v204_v11 = vld [vmem:[%s3010_s1 + $0x40] sm:$0xff]  ;;  %v205_v12 = vld [vmem:[%s3010_s1 + $0x48] sm:$0xff]  ;;  %v206_v13 = vld [vmem:[%s3010_s1 + $0x50] sm:$0xff]  ;;  %s1925_s8 = sshll.u32 %s188_s7, 3  ;;  %s2000_s9 = sshll.u32 %s2355_s19, 7 }
  0x19   : > { %s1999_s28 = sshll.u32 %s192_s27, 3  ;;  %v207_v14 = vld [vmem:[%s3010_s1 + $0x58] sm:$0xff]  ;;  %v208_v15 = vld [vmem:[%s3010_s1 + $0x60] sm:$0xff]  ;;  %v209_v16 = vld [vmem:[%s3010_s1 + $0x68] sm:$0xff]  ;;  %s2305_s27 = smov 64  }
  0x1a   : > { %s195_s5 = scalar_lea.vmem %s3009_s0, %s1999_s28  ;;  %v210_v17 = vld [vmem:[%s3010_s1 + $0x70] sm:$0xff]  ;;  %v211_v18 = vld [vmem:[%s3010_s1 + $0x78] sm:$0xff]  ;;  %v212_v19 = vld [vmem:[%s3010_s1 + $0x80] sm:$0xff]  ;;  %s2306_s28 = smov 32  }
  0x1b   : > { %v251_v1 = vld [vmem:[%s195_s5] sm:$0xff]  ;;  %v213_v20 = vld [vmem:[%s3010_s1 + $0x88] sm:$0xff]  ;;  %v214_v21 = vld [vmem:[%s3010_s1 + $0x90] sm:$0xff]  ;;  %s190_s10 = scalar_lea.vmem [#allocation3], %s1925_s8  ;;  %s2967_s14 = scalar_lea.hbm %s3013_s4, %s2000_s9 }
  0x1c   : > { %v253_v2 = vcombine.high %v251_v1, %v251_v1  ;;  %v215_v22 = vld [vmem:[%s3010_s1 + $0x98] sm:$0xff]  ;;  %v216_v23 = vld [vmem:[%s3010_s1 + $0xa0] sm:$0xff]  ;;  %v217_v24 = vld [vmem:[%s3010_s1 + $0xa8] sm:$0xff]  ;;  %s1862_s11 = sshll.u32 %s190_s10, 4  ;;  %s1848_s20 = scalar_lea.sflag [#allocation4], %s188_s7  ;;  %s2969_s11 = int_to_ptr.vmem [resolvable:$true] %s1862_s11 }
  0x1d   : > { %v218_v25 = vld [vmem:[%s3010_s1 + $0xb0] sm:$0xff]  ;;  %v219_v26 = vld [vmem:[%s3010_s1 + $0xb8] sm:$0xff]  ;;  %v220_v27 = vld [vmem:[%s3010_s1 + $0xc0] sm:$0xff]  ;;  %s2239_s22 = scalar_lea.vmem %s2969_s11, 128  ;;  %s2308_s19 = smov [#allocation3]  }
  0x1e   : > { %1928 = vmatprep.subr.msk.mxu0 %vm399_vm0, %v253_v2  ;;  %v221_v28 = vld [vmem:[%s3010_s1 + $0xc8] sm:$0xff]  ;;  %v222_v29 = vld [vmem:[%s3010_s1 + $0xd0] sm:$0xff]  ;;  %v223_v30 = vld [vmem:[%s3010_s1 + $0xd8] sm:$0xff]  ;;  %p2240_p11 = scmp.ne.s32.totalorder %s2969_s11, %s2239_s22 }
  0x1f   : > { %1929 = vmatpush1.msk.msra.mxu0 %vm399_vm0, %v251_v1  ;;  %v224_v31 = vld [vmem:[%s3010_s1 + $0xe0] sm:$0xff]  ;;  %v225_v32 = vld [vmem:[%s3010_s1 + $0xe8] sm:$0xff]  ;;  %v226_v33 = vld [vmem:[%s3010_s1 + $0xf0] sm:$0xff] }
  0x20   : > { %1930 = vmatmul.mubr.msk.f32.vlgmr.msra.gmra.mrb[0].mxu0 %vm254_vm1, %v196_v3  ;;  %v227_v34 = vld [vmem:[%s3010_s1 + $0xf8] sm:$0xff]  ;;  %v228_v35 = vld [vmem:[%s3010_s1 + $0x100] sm:$0xff]  ;;  %v229_v36 = vld [vmem:[%s3010_s1 + $0x108] sm:$0xff]  ;;  %p2241_p12 = pnand %p2240_p11, %p2372_p5 }
  0x21   : > { %474 = vmatprep.mubr.f32.mxu0 %v3014_v0  ;;  %v230_v37 = vld [vmem:[%s3010_s1 + $0x110] sm:$0xff]  ;;  %v231_v38 = vld [vmem:[%s3010_s1 + $0x118] sm:$0xff]  ;;  %v232_v39 = vld [vmem:[%s3010_s1 + $0x120] sm:$0xff] }
  0x22   : > { %v233_v40 = vld [vmem:[%s3010_s1 + $0x128] sm:$0xff]  ;;  %v234_v41 = vld [vmem:[%s3010_s1 + $0x130] sm:$0xff]  ;;  %v235_v42 = vld [vmem:[%s3010_s1 + $0x138] sm:$0xff]  ;;  %p2242_p13 = pneg %p2241_p12 }
  0x23   : > { %v236_v43 = vld [vmem:[%s3010_s1 + $0x140] sm:$0xff]  ;;  %v237_v44 = vld [vmem:[%s3010_s1 + $0x148] sm:$0xff]  ;;  %v238_v45 = vld [vmem:[%s3010_s1 + $0x150] sm:$0xff] }
  0x24   : > { %1931 = vmatmul.mubr.msk.f32.gmra.mrb[2].mxu0 %vm254_vm1, %v197_v4  ;;  %v239_v46 = vld [vmem:[%s3010_s1 + $0x158] sm:$0xff]  ;;  %v240_v47 = vld [vmem:[%s3010_s1 + $0x160] sm:$0xff]  ;;  %v241_v48 = vld [vmem:[%s3010_s1 + $0x168] sm:$0xff] }
  0x25   : > { %480 = vmatprep.mubr.f32.mxu0 %v3014_v0  ;;  %v242_v49 = vld [vmem:[%s3010_s1 + $0x170] sm:$0xff]  ;;  %v243_v50 = vld [vmem:[%s3010_s1 + $0x178] sm:$0xff] }
  0x28   : > { %1932 = vmatmul.mubr.msk.f32.gmra.mrb[4].mxu0 %vm254_vm1, %v198_v5 }
  0x29   : > { %486 = vmatprep.mubr.f32.mxu0 %v3014_v0 }
  0x2c   : > { %1933 = vmatmul.mubr.msk.f32.gmra.mrb[6].mxu0 %vm254_vm1, %v199_v6 }
  0x2d   : > { %492 = vmatprep.mubr.f32.mxu0 %v3014_v0 }
  0x30   : > { %1934 = vmatmul.mubr.msk.f32.gmra.mrb[8].mxu0 %vm254_vm1, %v200_v7 }
  0x31   : > { %498 = vmatprep.mubr.f32.mxu0 %v3014_v0 }
  0x34   : > { %1935 = vmatmul.mubr.msk.f32.gmra.mrb[10].mxu0 %vm254_vm1, %v201_v8 }
  0x35   : > { %504 = vmatprep.mubr.f32.mxu0 %v3014_v0 }
  0x38   : > { %1936 = vmatmul.mubr.msk.f32.gmra.mrb[12].mxu0 %vm254_vm1, %v202_v9 }
  0x39   : > { %510 = vmatprep.mubr.f32.mxu0 %v3014_v0 }
  0x3c   : > { %1937 = vmatmul.mubr.msk.f32.gmra.mrb[14].mxu0 %vm254_vm1, %v203_v10 }
  0x3d   : > { %516 = vmatprep.mubr.f32.mxu0 %v3014_v0 }
  0x40   : > { %1938 = vmatmul.mubr.msk.f32.gmra.mrb[16].mxu0 %vm254_vm1, %v204_v11 }
  0x41   : > { %522 = vmatprep.mubr.f32.mxu0 %v3014_v0 }
  0x44   : > { %1939 = vmatmul.mubr.msk.f32.gmra.mrb[18].mxu0 %vm254_vm1, %v205_v12 }
  0x45   : > { %528 = vmatprep.mubr.f32.mxu0 %v3014_v0 }
  0x48   : > { %1940 = vmatmul.mubr.msk.f32.gmra.mrb[20].mxu0 %vm254_vm1, %v206_v13 }
  0x49   : > { %534 = vmatprep.mubr.f32.mxu0 %v3014_v0 }
  0x4c   : > { %1941 = vmatmul.mubr.msk.f32.gmra.mrb[22].mxu0 %vm254_vm1, %v207_v14 }
  0x4d   : > { %540 = vmatprep.mubr.f32.mxu0 %v3014_v0 }
  0x50   : > { %1942 = vmatmul.mubr.msk.f32.gmra.mrb[24].mxu0 %vm254_vm1, %v208_v15 }
  0x51   : > { %546 = vmatprep.mubr.f32.mxu0 %v3014_v0 }
  0x54   : > { %1943 = vmatmul.mubr.msk.f32.gmra.mrb[26].mxu0 %vm254_vm1, %v209_v16 }
  0x55   : > { %552 = vmatprep.mubr.f32.mxu0 %v3014_v0 }
  0x58   : > { %1944 = vmatmul.mubr.msk.f32.gmra.mrb[28].mxu0 %vm254_vm1, %v210_v17 }
  0x59   : > { %558 = vmatprep.mubr.f32.mxu0 %v3014_v0 }
  0x5c   : > { %1945 = vmatmul.mubr.msk.f32.gmra.mrb[30].mxu0 %vm254_vm1, %v211_v18 }
  0x5d   : > { %564 = vmatprep.mubr.f32.mxu0 %v3014_v0 }
  0x60   : > { %1946 = vmatmul.mubr.msk.f32.gmra.mrb[32].mxu0 %vm254_vm1, %v212_v19 }
  0x61   : > { %570 = vmatprep.mubr.f32.mxu0 %v3014_v0 }
  0x64   : > { %1947 = vmatmul.mubr.msk.f32.gmra.mrb[34].mxu0 %vm254_vm1, %v213_v20 }
  0x65   : > { %576 = vmatprep.mubr.f32.mxu0 %v3014_v0 }
  0x68   : > { %1948 = vmatmul.mubr.msk.f32.gmra.mrb[36].mxu0 %vm254_vm1, %v214_v21 }
  0x69   : > { %582 = vmatprep.mubr.f32.mxu0 %v3014_v0 }
  0x6c   : > { %1949 = vmatmul.mubr.msk.f32.gmra.mrb[38].mxu0 %vm254_vm1, %v215_v22 }
  0x6d   : > { %588 = vmatprep.mubr.f32.mxu0 %v3014_v0 }
  0x70   : > { %1950 = vmatmul.mubr.msk.f32.gmra.mrb[40].mxu0 %vm254_vm1, %v216_v23 }
  0x71   : > { %594 = vmatprep.mubr.f32.mxu0 %v3014_v0 }
  0x74   : > { %1951 = vmatmul.mubr.msk.f32.gmra.mrb[42].mxu0 %vm254_vm1, %v217_v24 }
  0x75   : > { %600 = vmatprep.mubr.f32.mxu0 %v3014_v0 }
  0x78   : > { %1952 = vmatmul.mubr.msk.f32.gmra.mrb[44].mxu0 %vm254_vm1, %v218_v25 }
  0x79   : > { %606 = vmatprep.mubr.f32.mxu0 %v3014_v0 }
  0x7c   : > { %1953 = vmatmul.mubr.msk.f32.gmra.mrb[46].mxu0 %vm254_vm1, %v219_v26 }
  0x7d   : > { %612 = vmatprep.mubr.f32.mxu0 %v3014_v0 }
  0x80   : > { %1954 = vmatmul.mubr.msk.f32.gmra.mrb[48].mxu0 %vm254_vm1, %v220_v27 }
  0x81   : > { %618 = vmatprep.mubr.f32.mxu0 %v3014_v0 }
  0x84   : > { %1955 = vmatmul.mubr.msk.f32.gmra.mrb[50].mxu0 %vm254_vm1, %v221_v28 }
  0x85   : > { %624 = vmatprep.mubr.f32.mxu0 %v3014_v0 }
  0x88   : > { %1956 = vmatmul.mubr.msk.f32.gmra.mrb[52].mxu0 %vm254_vm1, %v222_v29 }
  0x89   : > { %630 = vmatprep.mubr.f32.mxu0 %v3014_v0 }
  0x8c   : > { %1957 = vmatmul.mubr.msk.f32.gmra.mrb[54].mxu0 %vm254_vm1, %v223_v30 }
  0x8d   : > { %636 = vmatprep.mubr.f32.mxu0 %v3014_v0 }
  0x90   : > { %1958 = vmatmul.mubr.msk.f32.gmra.mrb[56].mxu0 %vm254_vm1, %v224_v31 }
  0x91   : > { %642 = vmatprep.mubr.f32.mxu0 %v3014_v0 }
  0x94   : > { %1959 = vmatmul.mubr.msk.f32.gmra.mrb[58].mxu0 %vm254_vm1, %v225_v32 }
  0x95   : > { %648 = vmatprep.mubr.f32.mxu0 %v3014_v0 }
  0x98   : > { %1960 = vmatmul.mubr.msk.f32.gmra.mrb[60].mxu0 %vm254_vm1, %v226_v33 }
  0x99   : > { %654 = vmatprep.mubr.f32.mxu0 %v3014_v0 }
  0x9c   : > { %1961 = vmatmul.mubr.msk.f32.gmra.mrb[62].mxu0 %vm254_vm1, %v227_v34 }
  0x9d   : > { %660 = vmatprep.mubr.f32.mxu0 %v3014_v0 }
  0xa0   : > { %1962 = vmatmul.mubr.msk.f32.gmra.mrb[64].mxu0 %vm254_vm1, %v228_v35 }
  0xa1   : > { %666 = vmatprep.mubr.f32.mxu0 %v3014_v0 }
  0xa4   : > { %1963 = vmatmul.mubr.msk.f32.gmra.mrb[66].mxu0 %vm254_vm1, %v229_v36 }
  0xa5   : > { %672 = vmatprep.mubr.f32.mxu0 %v3014_v0 }
  0xa8   : > { %1964 = vmatmul.mubr.msk.f32.gmra.mrb[68].mxu0 %vm254_vm1, %v230_v37 }
  0xa9   : > { %678 = vmatprep.mubr.f32.mxu0 %v3014_v0 }
  0xac   : > { %1965 = vmatmul.mubr.msk.f32.gmra.mrb[70].mxu0 %vm254_vm1, %v231_v38 }
  0xad   : > { %684 = vmatprep.mubr.f32.mxu0 %v3014_v0 }
  0xb0   : > { %1966 = vmatmul.mubr.msk.f32.gmra.mrb[72].mxu0 %vm254_vm1, %v232_v39 }
  0xb1   : > { %690 = vmatprep.mubr.f32.mxu0 %v3014_v0 }
  0xb4   : > { %1967 = vmatmul.mubr.msk.f32.gmra.mrb[74].mxu0 %vm254_vm1, %v233_v40 }
  0xb5   : > { %696 = vmatprep.mubr.f32.mxu0 %v3014_v0 }
  0xb8   : > { %1968 = vmatmul.mubr.msk.f32.gmra.mrb[76].mxu0 %vm254_vm1, %v234_v41 }
  0xb9   : > { %702 = vmatprep.mubr.f32.mxu0 %v3014_v0 }
  0xbc   : > { %1969 = vmatmul.mubr.msk.f32.gmra.mrb[78].mxu0 %vm254_vm1, %v235_v42 }
  0xbd   : > { %708 = vmatprep.mubr.f32.mxu0 %v3014_v0 }
  0xc0   : > { %1970 = vmatmul.mubr.msk.f32.gmra.mrb[80].mxu0 %vm254_vm1, %v236_v43 }
  0xc1   : > { %714 = vmatprep.mubr.f32.mxu0 %v3014_v0 }
  0xc4   : > { %1971 = vmatmul.mubr.msk.f32.gmra.mrb[82].mxu0 %vm254_vm1, %v237_v44 }
  0xc5   : > { %720 = vmatprep.mubr.f32.mxu0 %v3014_v0 }
  0xc8   : > { %1972 = vmatmul.mubr.msk.f32.gmra.mrb[84].mxu0 %vm254_vm1, %v238_v45 }
  0xc9   : > { %726 = vmatprep.mubr.f32.mxu0 %v3014_v0 }
  0xcc   : > { %1973 = vmatmul.mubr.msk.f32.gmra.mrb[86].mxu0 %vm254_vm1, %v239_v46 }
  0xcd   : > { %732 = vmatprep.mubr.f32.mxu0 %v3014_v0 }
  0xd0   : > { %1974 = vmatmul.mubr.msk.f32.gmra.mrb[88].mxu0 %vm254_vm1, %v240_v47 }
  0xd1   : > { %738 = vmatprep.mubr.f32.mxu0 %v3014_v0 }
  0xd4   : > { %1975 = vmatmul.mubr.msk.f32.gmra.mrb[90].mxu0 %vm254_vm1, %v241_v48 }
  0xd5   : > { %744 = vmatprep.mubr.f32.mxu0 %v3014_v0 }
  0xd8   : > { %1976 = vmatmul.mubr.msk.f32.gmra.mrb[92].mxu0 %vm254_vm1, %v242_v49 }
  0xd9   : > { %750 = vmatprep.mubr.f32.mxu0 %v3014_v0 }
  0xdc   : > { %1977 = vmatmul.mubr.msk.f32.gmra.mrb[94].mxu0 %vm254_vm1, %v243_v50 }
  0xdd   : > { %1835 = vmatprep.mubr.f32.mxu0 %v3014_v0 }
  0xf3   : > { %v2628_v51 = vpop.f32.mrb[0].mxu0 }
  0xf4   : > { %v2630_v52 = vpop.f32.mrb[1].mxu0 }
  0xf7   : > { %v2632_v53 = vpop.f32.mrb[2].mxu0 }
  0xf8   : > { %v2636_v55 = vpop.f32.mrb[3].mxu0 }
  0xfb   : > { %v2640_v57 = vpop.f32.mrb[4].mxu0 }
  0xfc   : > { %v2642_v58 = vpop.f32.mrb[5].mxu0 }
  0xff   : > { %v2644_v59 = vpop.f32.mrb[6].mxu0 }
 0x100   : > { %v2648_v61 = vpop.f32.mrb[7].mxu0 }
 0x103   : > { %v2652_v63 = vpop.f32.mrb[8].mxu0 }
 0x104   : > { %v2654_v1 = vpop.f32.mrb[9].mxu0 }
 0x107   : > { %v2656_v2 = vpop.f32.mrb[10].mxu0 }
 0x108   : > { %v2660_v4 = vpop.f32.mrb[11].mxu0 }
 0x10b   : > { %v2664_v6 = vpop.f32.mrb[12].mxu0 }
 0x10c   : > { %3036 = vst [vmem:[#allocation6_spill] sm:$0xff] %v2664_v6  ;;  %v2666_v7 = vpop.f32.mrb[13].mxu0 }
 0x10f   : > { %v2668_v8 = vpop.f32.mrb[14].mxu0 }
 0x110   : > { %3037 = vst [vmem:[#allocation7_spill] sm:$0xff] %v2668_v8  ;;  %v2672_v10 = vpop.f32.mrb[15].mxu0 }
 0x113   : > { %v2676_v12 = vpop.f32.mrb[16].mxu0 }
 0x114   : > { %3038 = vst [vmem:[#allocation8_spill] sm:$0xff] %v2676_v12  ;;  %v2678_v13 = vpop.f32.mrb[17].mxu0 }
 0x115   : > { %3039 = vst [vmem:[#allocation9_spill] sm:$0xff] %v2678_v13 }
 0x117   : > { %v2680_v14 = vpop.f32.mrb[18].mxu0 }
 0x118   : > { %3040 = vst [vmem:[#allocation10_spill] sm:$0xff] %v2680_v14  ;;  %v2684_v16 = vpop.f32.mrb[19].mxu0 }
 0x119   : > { %3041 = vst [vmem:[#allocation11_spill] sm:$0xff] %v2684_v16 }
 0x11b   : > { %v2688_v18 = vpop.f32.mrb[20].mxu0 }
 0x11c   : > { %3042 = vst [vmem:[#allocation12_spill] sm:$0xff] %v2688_v18  ;;  %v2690_v19 = vpop.f32.mrb[21].mxu0 }
 0x11d   : > { %3043 = vst [vmem:[#allocation13_spill] sm:$0xff] %v2690_v19 }
 0x11f   : > { %v2692_v20 = vpop.f32.mrb[22].mxu0 }
 0x120   : > { %3044 = vst [vmem:[#allocation14_spill] sm:$0xff] %v2692_v20  ;;  %v2696_v22 = vpop.f32.mrb[23].mxu0 }
 0x121   : > { %3045 = vst [vmem:[#allocation15_spill] sm:$0xff] %v2696_v22 }
 0x123   : > { %v2700_v24 = vpop.f32.mrb[24].mxu0 }
 0x124   : > { %3046 = vst [vmem:[#allocation16_spill] sm:$0xff] %v2700_v24  ;;  %v2702_v25 = vpop.f32.mrb[25].mxu0 }
 0x125   : > { %3047 = vst [vmem:[#allocation17_spill] sm:$0xff] %v2702_v25 }
 0x127   : > { %v2704_v26 = vpop.f32.mrb[26].mxu0 }
 0x128   : > { %3048 = vst [vmem:[#allocation18_spill] sm:$0xff] %v2704_v26  ;;  %v2708_v28 = vpop.f32.mrb[27].mxu0 }
 0x129   : > { %3049 = vst [vmem:[#allocation19_spill] sm:$0xff] %v2708_v28 }
 0x12b   : > { %v2712_v30 = vpop.f32.mrb[28].mxu0 }
 0x12c   : > { %3050 = vst [vmem:[#allocation20_spill] sm:$0xff] %v2712_v30  ;;  %v2714_v31 = vpop.f32.mrb[29].mxu0 }
 0x12d   : > { %3051 = vst [vmem:[#allocation21_spill] sm:$0xff] %v2714_v31 }
 0x12f   : > { %v2716_v32 = vpop.f32.mrb[30].mxu0 }
 0x130   : > { %3052 = vst [vmem:[#allocation22_spill] sm:$0xff] %v2716_v32  ;;  %v2720_v34 = vpop.f32.mrb[31].mxu0 }
 0x131   : > { %3053 = vst [vmem:[#allocation23_spill] sm:$0xff] %v2720_v34 }
 0x133   : > { %v2724_v36 = vpop.f32.mrb[32].mxu0 }
 0x134   : > { %v2726_v37 = vpop.f32.mrb[33].mxu0 }
 0x135   : > { %v757_v38 = vmax.f32 %v2724_v36, %v2726_v37 }
 0x137   : > { %758 = vmax.xlane.f32.xlu0 %v757_v38  ;;  %v2730_v39 = vpop.f32.mrb[34].mxu0 }
 0x138   : > { %v2732_v40 = vpop.f32.mrb[35].mxu0 }
 0x139   : > { %v760_v41 = vmax.f32 %v2730_v39, %v2732_v40 }
 0x13b   : > { %761 = vmax.xlane.f32.xlu0 %v760_v41  ;;  %v2736_v42 = vpop.f32.mrb[36].mxu0 }
 0x13c   : > { %v2738_v43 = vpop.f32.mrb[37].mxu0 }
 0x13d   : > { %v763_v44 = vmax.f32 %v2736_v42, %v2738_v43 }
 0x13f   : > { %764 = vmax.xlane.f32.xlu1 %v763_v44  ;;  %v2742_v45 = vpop.f32.mrb[38].mxu0 }
 0x140   : > { %v2744_v46 = vpop.f32.mrb[39].mxu0 }
 0x141   : > { %v766_v47 = vmax.f32 %v2742_v45, %v2744_v46 }
 0x143   : > { %767 = vmax.xlane.f32.xlu1 %v766_v47  ;;  %v2748_v48 = vpop.f32.mrb[40].mxu0 }
 0x144   : > { %v2750_v49 = vpop.f32.mrb[41].mxu0 }
 0x145   : > { %v769_v50 = vmax.f32 %v2748_v48, %v2750_v49 }
 0x147   : > { %770 = vmax.xlane.f32.xlu0 %v769_v50  ;;  %v2754_v38 = vpop.f32.mrb[42].mxu0 }
 0x148   : > { %v2756_v41 = vpop.f32.mrb[43].mxu0 }
 0x149   : > { %v772_v44 = vmax.f32 %v2754_v38, %v2756_v41 }
 0x14b   : > { %773 = vmax.xlane.f32.xlu1 %v772_v44  ;;  %v2760_v33 = vpop.f32.mrb[44].mxu0 }
 0x14c   : > { %v2762_v35 = vpop.f32.mrb[45].mxu0 }
 0x14d   : > { %v775_v47 = vmax.f32 %v2760_v33, %v2762_v35 }
 0x14f   : > { %776 = vmax.xlane.f32.xlu0 %v775_v47  ;;  %v2766_v27 = vpop.f32.mrb[46].mxu0 }
 0x150   : > { %v2768_v29 = vpop.f32.mrb[47].mxu0 }
 0x151   : > { %v778_v50 = vmax.f32 %v2766_v27, %v2768_v29 }
 0x153   : > { %779 = vmax.xlane.f32.xlu1 %v778_v50  ;;  %v2772_v21 = vpop.f32.mrb[48].mxu0 }
 0x154   : > { %v2774_v23 = vpop.f32.mrb[49].mxu0 }
 0x155   : > { %v781_v44 = vmax.f32 %v2772_v21, %v2774_v23 }
 0x157   : > { %782 = vmax.xlane.f32.xlu0 %v781_v44  ;;  %v2778_v15 = vpop.f32.mrb[50].mxu0 }
 0x158   : > { %v2780_v17 = vpop.f32.mrb[51].mxu0 }
 0x159   : > { %v784_v47 = vmax.f32 %v2778_v15, %v2780_v17 }
 0x15b   : > { %785 = vmax.xlane.f32.xlu1 %v784_v47  ;;  %v2784_v9 = vpop.f32.mrb[52].mxu0 }
 0x15c   : > { %v2786_v11 = vpop.f32.mrb[53].mxu0 }
 0x15d   : > { %v787_v50 = vmax.f32 %v2784_v9, %v2786_v11 }
 0x15f   : > { %788 = vmax.xlane.f32.xlu0 %v787_v50  ;;  %v2790_v3 = vpop.f32.mrb[54].mxu0 }
 0x160   : > { %v2792_v0 = vpop.f32.mrb[55].mxu0 }
 0x161   : > { %v790_v44 = vmax.f32 %v2790_v3, %v2792_v0 }
 0x163   : > { %791 = vmax.xlane.f32.xlu1 %v790_v44  ;;  %v2796_v5 = vpop.f32.mrb[56].mxu0 }
 0x164   : > { %v2798_v60 = vpop.f32.mrb[57].mxu0 }
 0x165   : > { %v793_v47 = vmax.f32 %v2796_v5, %v2798_v60 }
 0x167   : > { %794 = vmax.xlane.f32.xlu0 %v793_v47  ;;  %v2802_v62 = vpop.f32.mrb[58].mxu0 }
 0x168   : > { %v2804_v54 = vpop.f32.mrb[59].mxu0 }
 0x169   : > { %v796_v50 = vmax.f32 %v2802_v62, %v2804_v54 }
 0x16b   : > { %797 = vmax.xlane.f32.xlu1 %v796_v50  ;;  %v2808_v56 = vpop.f32.mrb[60].mxu0 }
 0x16c   : > { %v2810_v30 = vpop.f32.mrb[61].mxu0 }
 0x16d   : > { %v799_v44 = vmax.f32 %v2808_v56, %v2810_v30 }
 0x16f   : > { %800 = vmax.xlane.f32.xlu0 %v799_v44  ;;  %v2814_v32 = vpop.f32.mrb[62].mxu0 }
 0x170   : > { %v2816_v31 = vpop.f32.mrb[63].mxu0 }
 0x171   : > { %v802_v47 = vmax.f32 %v2814_v32, %v2816_v31 }
 0x173   : > { %803 = vmax.xlane.f32.xlu1 %v802_v47  ;;  %v662_v34 = vpop.f32.mrb[64].mxu0 }
 0x174   : > { %v664_v24 = vpop.f32.mrb[65].mxu0 }
 0x177   : > { %v668_v26 = vpop.f32.mrb[66].mxu0 }
 0x178   : > { %v2003_v50 = vpack.c.bf16 %v668_v26, %v662_v34  ;;  %v670_v25 = vpop.f32.mrb[67].mxu0 }
 0x179   : > { %v2001_v28 = vpack.c.bf16 %v670_v25, %v664_v24 }
 0x17b   : > { %2002 = vmatprep.subr.bf16.mxu1 %v2001_v28  ;;  %v674_v18 = vpop.f32.mrb[68].mxu0 }
 0x17c   : > { %2004 = vmatpush1.bf16.xpose.msra.mxu1 %v2003_v50  ;;  %v676_v20 = vpop.f32.mrb[69].mxu0 }
 0x17f   : > { %v680_v19 = vpop.f32.mrb[70].mxu0 }
 0x180   : > { %v2007_v44 = vpack.c.bf16 %v680_v19, %v674_v18  ;;  %v682_v22 = vpop.f32.mrb[71].mxu0 }
 0x181   : > { %v2005_v12 = vpack.c.bf16 %v682_v22, %v676_v20 }
 0x183   : > { %2006 = vmatprep.subr.bf16.mxu1 %v2005_v12  ;;  %v686_v14 = vpop.f32.mrb[72].mxu0 }
 0x184   : > { %2008 = vmatpush1.bf16.xpose.msra.mxu1 %v2007_v44  ;;  %v688_v13 = vpop.f32.mrb[73].mxu0 }
 0x187   : > { %v692_v16 = vpop.f32.mrb[74].mxu0 }
 0x188   : > { %v2011_v47 = vpack.c.bf16 %v692_v16, %v686_v14  ;;  %v694_v6 = vpop.f32.mrb[75].mxu0 }
 0x189   : > { %v2009_v8 = vpack.c.bf16 %v694_v6, %v688_v13 }
 0x18b   : > { %2010 = vmatprep.subr.bf16.mxu1 %v2009_v8  ;;  %v698_v26 = vpop.f32.mrb[76].mxu0 }
 0x18c   : > { %2012 = vmatpush1.bf16.xpose.msra.mxu1 %v2011_v47  ;;  %v700_v24 = vpop.f32.mrb[77].mxu0 }
 0x18f   : > { %v704_v25 = vpop.f32.mrb[78].mxu0 }
 0x190   : > { %v2015_v28 = vpack.c.bf16 %v704_v25, %v698_v26  ;;  %v706_v34 = vpop.f32.mrb[79].mxu0 }
 0x191   : > { %v2013_v50 = vpack.c.bf16 %v706_v34, %v700_v24 }
 0x193   : > { %2014 = vmatprep.subr.bf16.mxu1 %v2013_v50  ;;  %v710_v18 = vpop.f32.mrb[80].mxu0 }
 0x194   : > { %2016 = vmatpush1.bf16.xpose.msra.mxu1 %v2015_v28  ;;  %v712_v19 = vpop.f32.mrb[81].mxu0 }
 0x197   : > { %v716_v12 = vpop.f32.mrb[82].mxu0 }
 0x198   : > { %v2019_v20 = vpack.c.bf16 %v716_v12, %v710_v18  ;;  %v718_v22 = vpop.f32.mrb[83].mxu0 }
 0x199   : > { %v2017_v44 = vpack.c.bf16 %v718_v22, %v712_v19 }
 0x19b   : > { %2018 = vmatprep.subr.bf16.mxu1 %v2017_v44  ;;  %v722_v14 = vpop.f32.mrb[84].mxu0 }
 0x19c   : > { %2020 = vmatpush1.bf16.xpose.msra.mxu1 %v2019_v20  ;;  %v724_v6 = vpop.f32.mrb[85].mxu0 }
 0x19f   : > { %v728_v8 = vpop.f32.mrb[86].mxu0 }
 0x1a0   : > { %v2023_v13 = vpack.c.bf16 %v728_v8, %v722_v14  ;;  %v730_v16 = vpop.f32.mrb[87].mxu0  ;;  %v3054_v14 = vpack.c.bf16 %v2636_v55, %v2630_v52 }
 0x1a1   : > { %v2021_v47 = vpack.c.bf16 %v730_v16, %v724_v6 }
 0x1a3   : > { %2022 = vmatprep.subr.bf16.mxu1 %v2021_v47  ;;  %v734_v26 = vpop.f32.mrb[88].mxu0 }
 0x1a4   : > { %2024 = vmatpush1.bf16.xpose.msra.mxu1 %v2023_v13  ;;  %v736_v24 = vpop.f32.mrb[89].mxu0 }
 0x1a7   : > { %v740_v25 = vpop.f32.mrb[90].mxu0 }
 0x1a8   : > { %v2027_v34 = vpack.c.bf16 %v740_v25, %v734_v26  ;;  %v742_v28 = vpop.f32.mrb[91].mxu0 }
 0x1a9   : > { %v2025_v50 = vpack.c.bf16 %v742_v28, %v736_v24 }
 0x1ab   : > { %2026 = vmatprep.subr.bf16.mxu1 %v2025_v50  ;;  %v746_v18 = vpop.f32.mrb[92].mxu0 }
 0x1ac   : > { %2028 = vmatpush1.bf16.xpose.msra.mxu1 %v2027_v34  ;;  %v748_v19 = vpop.f32.mrb[93].mxu0 }
 0x1af   : > { %v752_v12 = vpop.f32.mrb[94].mxu0 }
 0x1b0   : > { %v2031_v22 = vpack.c.bf16 %v752_v12, %v746_v18  ;;  %v754_v20 = vpop.f32.mrb[95].mxu0 }
 0x1b1   : > { %v2029_v44 = vpack.c.bf16 %v754_v20, %v748_v19 }
 0x1b3   : > { %2030 = vmatprep.subr.bf16.mxu1 %v2029_v44 }
 0x1b4   : > { %2032 = vmatpush1.bf16.xpose.msra.mxu1 %v2031_v22 }
 0x1b5   : > { %2034 = vmatprep.subr.bf16.mxu1 %v3054_v14 }
 0x1c4   : > { %v759_v6 = vpop.xlane.xlu0 %758 }
 0x1c5   : > { %v805_v8 = vsub.f32 %v2724_v36, %v759_v6  ;;  %v806_v13 = vsub.f32 %v2726_v37, %v759_v6 }
 0x1c7   : > { %v837_v16 = vmul.f32 1.442695, %v805_v8  ;;  %v839_v47 = vmul.f32 1.442695, %v806_v13 }
 0x1c8   : > { %v762_v26 = vpop.xlane.xlu0 %761 }
 0x1c9   : > { %2143 = vpow2.f32 %v837_v16  ;;  %v807_v24 = vsub.f32 %v2730_v39, %v762_v26  ;;  %v808_v25 = vsub.f32 %v2732_v40, %v762_v26  ;;  %v3056_v16 = vpack.c.bf16 %v2648_v61, %v2642_v58 }
 0x1ca   : > { %2145 = vpow2.f32 %v839_v47  ;;  %v3058_v61 = vpack.c.bf16 %v2660_v4, %v2654_v1 }
 0x1cb   : > { %v841_v34 = vmul.f32 1.442695, %v807_v24  ;;  %v843_v28 = vmul.f32 1.442695, %v808_v25 }
 0x1cc   : > { %v765_v50 = vpop.xlane.xlu1 %764 }
 0x1cd   : > { %2147 = vpow2.f32 %v841_v34  ;;  %v809_v52 = vsub.f32 %v2736_v42, %v765_v50  ;;  %v810_v55 = vsub.f32 %v2738_v43, %v765_v50 }
 0x1ce   : > { %2149 = vpow2.f32 %v843_v28 }
 0x1cf   : > { %v845_v36 = vmul.f32 1.442695, %v809_v52  ;;  %v847_v37 = vmul.f32 1.442695, %v810_v55 }
 0x1d0   : > { %v768_v18 = vpop.xlane.xlu1 %767 }
 0x1d1   : > { %2151 = vpow2.f32 %v845_v36  ;;  %v811_v19 = vsub.f32 %v2742_v45, %v768_v18  ;;  %v812_v39 = vsub.f32 %v2744_v46, %v768_v18  ;;  %v3055_v46 = vpack.c.bf16 %v2632_v53, %v2628_v51 }
 0x1d2   : > { %2153 = vpow2.f32 %v847_v37  ;;  %v3057_v53 = vpack.c.bf16 %v2644_v59, %v2640_v57 }
 0x1d3   : > { %v2144_v40 = vpop.eup %2143  ;;  %v849_v12 = vmul.f32 1.442695, %v811_v19  ;;  %v851_v22 = vmul.f32 1.442695, %v812_v39 }
 0x1d4   : > { %v2146_v20 = vpop.eup %2145  ;;  %v771_v44 = vpop.xlane.xlu0 %770 }
 0x1d5   : > { %2155 = vpow2.f32 %v849_v12  ;;  %1029 = vmatprep.mubr.f32.mxu1 %v2146_v20  ;;  %v813_v42 = vsub.f32 %v2748_v48, %v771_v44  ;;  %v814_v43 = vsub.f32 %v2750_v49, %v771_v44  ;;  %v2833_v14 = vadd.f32 %v2146_v20, %v2144_v40 }
 0x1d6   : > { %2157 = vpow2.f32 %v851_v22  ;;  %1030 = vmatmul.mubr.f32.vlgmr.msra.gmra.mrb[0].mxu1 %v2144_v40 }
 0x1d7   : > { %v2148_v6 = vpop.eup %2147  ;;  %v853_v45 = vmul.f32 1.442695, %v813_v42  ;;  %v855_v8 = vmul.f32 1.442695, %v814_v43  ;;  %2036 = vmatpush1.bf16.msra.mxu1 %v3055_v46 }
 0x1d8   : > { %v2150_v13 = vpop.eup %2149  ;;  %2038 = vmatprep.subr.bf16.mxu1 %v3056_v16  ;;  %v774_v47 = vpop.xlane.xlu1 %773 }
 0x1d9   : > { %2159 = vpow2.f32 %v853_v45  ;;  %v815_v48 = vsub.f32 %v2754_v38, %v774_v47  ;;  %v816_v49 = vsub.f32 %v2756_v41, %v774_v47  ;;  %1034 = vmatprep.mubr.f32.mxu1 %v2150_v13  ;;  %v2843_v26 = vadd.f32 %v2150_v13, %v2148_v6 }
 0x1da   : > { %2161 = vpow2.f32 %v855_v8  ;;  %1035 = vmatmul.mubr.f32.gmra.mrb[2].mxu1 %v2148_v6 }
 0x1db   : > { %v2152_v24 = vpop.eup %2151  ;;  %v857_v25 = vmul.f32 1.442695, %v815_v48  ;;  %v859_v51 = vmul.f32 1.442695, %v816_v49  ;;  %2040 = vmatpush1.bf16.msra.mxu1 %v3057_v53 }
 0x1dc   : > { %v2154_v58 = vpop.eup %2153  ;;  %2042 = vmatprep.subr.bf16.mxu1 %v3058_v61  ;;  %v777_v38 = vpop.xlane.xlu0 %776 }
 0x1dd   : > { %2163 = vpow2.f32 %v857_v25  ;;  %v817_v41 = vsub.f32 %v2760_v33, %v777_v38  ;;  %v818_v34 = vsub.f32 %v2762_v35, %v777_v38  ;;  %1039 = vmatprep.mubr.f32.mxu1 %v2154_v58  ;;  %v2853_v28 = vadd.f32 %v2154_v58, %v2152_v24 }
 0x1de   : > { %2165 = vpow2.f32 %v859_v51  ;;  %1040 = vmatmul.mubr.f32.gmra.mrb[4].mxu1 %v2152_v24 }
 0x1df   : > { %v2156_v50 = vpop.eup %2155  ;;  %v861_v52 = vmul.f32 1.442695, %v817_v41  ;;  %v863_v57 = vmul.f32 1.442695, %v818_v34 }
 0x1e0   : > { %v2158_v59 = vpop.eup %2157  ;;  %v780_v55 = vpop.xlane.xlu1 %779 }
 0x1e1   : > { %2167 = vpow2.f32 %v861_v52  ;;  %v819_v1 = vsub.f32 %v2766_v27, %v780_v55  ;;  %v820_v4 = vsub.f32 %v2768_v29, %v780_v55  ;;  %1044 = vmatprep.mubr.f32.mxu1 %v2158_v59  ;;  %v2857_v36 = vadd.f32 %v2158_v59, %v2156_v50 }
 0x1e2   : > { %2169 = vpow2.f32 %v863_v57  ;;  %1045 = vmatmul.mubr.f32.gmra.mrb[6].mxu1 %v2156_v50 }
 0x1e3   : > { %v2160_v33 = vpop.eup %2159  ;;  %v865_v35 = vmul.f32 1.442695, %v819_v1  ;;  %v867_v37 = vmul.f32 1.442695, %v820_v4 }
 0x1e4   : > { %v2162_v18 = vpop.eup %2161  ;;  %v783_v19 = vpop.xlane.xlu0 %782 }
 0x1e5   : > { %2171 = vpow2.f32 %v865_v35  ;;  %v821_v39 = vsub.f32 %v2772_v21, %v783_v19  ;;  %v822_v40 = vsub.f32 %v2774_v23, %v783_v19  ;;  %1049 = vmatprep.mubr.f32.mxu1 %v2162_v18  ;;  %v913_v12 = vadd.f32 %v2162_v18, %v2160_v33 }
 0x1e6   : > { %2173 = vpow2.f32 %v867_v37  ;;  %1050 = vmatmul.mubr.f32.gmra.mrb[8].mxu1 %v2160_v33 }
 0x1e7   : > { %v2164_v27 = vpop.eup %2163  ;;  %v869_v29 = vmul.f32 1.442695, %v821_v39  ;;  %v871_v22 = vmul.f32 1.442695, %v822_v40  ;;  %914 = vadd.xlane.f32.xlu0 %v913_v12 }
 0x1e8   : > { %v2166_v20 = vpop.eup %2165  ;;  %v786_v44 = vpop.xlane.xlu1 %785 }
 0x1e9   : > { %2175 = vpow2.f32 %v869_v29  ;;  %v823_v42 = vsub.f32 %v2778_v15, %v786_v44  ;;  %v824_v43 = vsub.f32 %v2780_v17, %v786_v44  ;;  %1054 = vmatprep.mubr.f32.mxu1 %v2166_v20  ;;  %v916_v6 = vadd.f32 %v2166_v20, %v2164_v27 }
 0x1ea   : > { %2177 = vpow2.f32 %v871_v22  ;;  %1055 = vmatmul.mubr.f32.gmra.mrb[10].mxu1 %v2164_v27 }
 0x1eb   : > { %v2168_v21 = vpop.eup %2167  ;;  %v873_v23 = vmul.f32 1.442695, %v823_v42  ;;  %v875_v45 = vmul.f32 1.442695, %v824_v43  ;;  %917 = vadd.xlane.f32.xlu1 %v916_v6 }
 0x1ec   : > { %v2170_v8 = vpop.eup %2169  ;;  %v789_v46 = vpop.xlane.xlu0 %788 }
 0x1ed   : > { %2179 = vpow2.f32 %v873_v23  ;;  %v825_v13 = vsub.f32 %v2784_v9, %v789_v46  ;;  %v826_v16 = vsub.f32 %v2786_v11, %v789_v46  ;;  %1059 = vmatprep.mubr.f32.mxu1 %v2170_v8  ;;  %v919_v47 = vadd.f32 %v2170_v8, %v2168_v21 }
 0x1ee   : > { %2181 = vpow2.f32 %v875_v45  ;;  %1060 = vmatmul.mubr.f32.gmra.mrb[12].mxu1 %v2168_v21 }
 0x1ef   : > { %v2172_v15 = vpop.eup %2171  ;;  %v877_v17 = vmul.f32 1.442695, %v825_v13  ;;  %v879_v48 = vmul.f32 1.442695, %v826_v16  ;;  %920 = vadd.xlane.f32.xlu0 %v919_v47  ;;  %v3059_v16 = vmov 0.0  }
 0x1f0   : > { %v2174_v49 = vpop.eup %2173  ;;  %v792_v24 = vpop.xlane.xlu1 %791 }
 0x1f1   : > { %2183 = vpow2.f32 %v877_v17  ;;  %v827_v25 = vsub.f32 %v2790_v3, %v792_v24  ;;  %v828_v51 = vsub.f32 %v2792_v0, %v792_v24  ;;  %1064 = vmatprep.mubr.f32.mxu1 %v2174_v49  ;;  %v922_v53 = vadd.f32 %v2174_v49, %v2172_v15 }
 0x1f2   : > { %2185 = vpow2.f32 %v879_v48  ;;  %1065 = vmatmul.mubr.f32.gmra.mrb[14].mxu1 %v2172_v15 }
 0x1f3   : > { %v2176_v9 = vpop.eup %2175  ;;  %v881_v11 = vmul.f32 1.442695, %v827_v25  ;;  %v883_v58 = vmul.f32 1.442695, %v828_v51  ;;  %923 = vadd.xlane.f32.xlu1 %v922_v53 }
 0x1f4   : > { %v2178_v61 = vpop.eup %2177  ;;  %v795_v38 = vpop.xlane.xlu0 %794 }
 0x1f5   : > { %2187 = vpow2.f32 %v881_v11  ;;  %v829_v41 = vsub.f32 %v2796_v5, %v795_v38  ;;  %v830_v34 = vsub.f32 %v2798_v60, %v795_v38  ;;  %1069 = vmatprep.mubr.f32.mxu1 %v2178_v61  ;;  %v925_v50 = vadd.f32 %v2178_v61, %v2176_v9 }
 0x1f6   : > { %2189 = vpow2.f32 %v883_v58  ;;  %1070 = vmatmul.mubr.f32.gmra.mrb[16].mxu1 %v2176_v9 }
 0x1f7   : > { %v2180_v0 = vpop.eup %2179  ;;  %v885_v3 = vmul.f32 1.442695, %v829_v41  ;;  %v887_v52 = vmul.f32 1.442695, %v830_v34  ;;  %926 = vadd.xlane.f32.xlu0 %v925_v50 }
 0x1f8   : > { %v2182_v57 = vpop.eup %2181  ;;  %v798_v59 = vpop.xlane.xlu1 %797 }
 0x1f9   : > { %2191 = vpow2.f32 %v885_v3  ;;  %v831_v55 = vsub.f32 %v2802_v62, %v798_v59  ;;  %v832_v1 = vsub.f32 %v2804_v54, %v798_v59  ;;  %1074 = vmatprep.mubr.f32.mxu1 %v2182_v57  ;;  %v928_v4 = vadd.f32 %v2182_v57, %v2180_v0 }
 0x1fa   : > { %2193 = vpow2.f32 %v887_v52  ;;  %1075 = vmatmul.mubr.f32.gmra.mrb[18].mxu1 %v2180_v0 }
 0x1fb   : > { %v2184_v60 = vpop.eup %2183  ;;  %v889_v5 = vmul.f32 1.442695, %v831_v55  ;;  %v891_v33 = vmul.f32 1.442695, %v832_v1  ;;  %929 = vadd.xlane.f32.xlu1 %v928_v4 }
 0x1fc   : > { %v2186_v35 = vpop.eup %2185  ;;  %v801_v37 = vpop.xlane.xlu0 %800 }
 0x1fd   : > { %2195 = vpow2.f32 %v889_v5  ;;  %v833_v18 = vsub.f32 %v2808_v56, %v801_v37  ;;  %v834_v19 = vsub.f32 %v2810_v30, %v801_v37  ;;  %1079 = vmatprep.mubr.f32.mxu1 %v2186_v35  ;;  %v931_v39 = vadd.f32 %v2186_v35, %v2184_v60 }
 0x1fe   : > { %2197 = vpow2.f32 %v891_v33  ;;  %1080 = vmatmul.mubr.f32.gmra.mrb[20].mxu1 %v2184_v60 }
 0x1ff   : > { %v2188_v54 = vpop.eup %2187  ;;  %v893_v62 = vmul.f32 1.442695, %v833_v18  ;;  %v895_v40 = vmul.f32 1.442695, %v834_v19  ;;  %932 = vadd.xlane.f32.xlu0 %v931_v39 }
 0x200   : > { %v2190_v12 = vpop.eup %2189  ;;  %v804_v27 = vpop.xlane.xlu1 %803 }
 0x201   : > { %2199 = vpow2.f32 %v893_v62  ;;  %v835_v29 = vsub.f32 %v2814_v32, %v804_v27  ;;  %v836_v22 = vsub.f32 %v2816_v31, %v804_v27  ;;  %1084 = vmatprep.mubr.f32.mxu1 %v2190_v12  ;;  %v934_v20 = vadd.f32 %v2190_v12, %v2188_v54 }
 0x202   : > { %2201 = vpow2.f32 %v895_v40  ;;  %1085 = vmatmul.mubr.f32.gmra.mrb[22].mxu1 %v2188_v54 }
 0x203   : > { %v2192_v56 = vpop.eup %2191  ;;  %v897_v30 = vmul.f32 1.442695, %v835_v29  ;;  %v899_v44 = vmul.f32 1.442695, %v836_v22  ;;  %935 = vadd.xlane.f32.xlu1 %v934_v20 }
 0x204   : > { %v2194_v42 = vpop.eup %2193 }
 0x205   : > { %2203 = vpow2.f32 %v897_v30  ;;  %1089 = vmatprep.mubr.f32.mxu1 %v2194_v42  ;;  %v937_v43 = vadd.f32 %v2194_v42, %v2192_v56 }
 0x206   : > { %2205 = vpow2.f32 %v899_v44  ;;  %1090 = vmatmul.mubr.f32.gmra.mrb[24].mxu1 %v2192_v56 }
 0x207   : > { %v2196_v6 = vpop.eup %2195  ;;  %938 = vadd.xlane.f32.xlu0 %v937_v43 }
 0x208   : > { %v2198_v21 = vpop.eup %2197 }
 0x209   : > { %1094 = vmatprep.mubr.f32.mxu1 %v2198_v21  ;;  %v940_v32 = vadd.f32 %v2198_v21, %v2196_v6 }
 0x20a   : > { %1095 = vmatmul.mubr.f32.gmra.mrb[26].mxu1 %v2196_v6 }
 0x20b   : > { %v2200_v31 = vpop.eup %2199  ;;  %941 = vadd.xlane.f32.xlu1 %v940_v32 }
 0x20c   : > { %v2202_v23 = vpop.eup %2201 }
 0x20d   : > { %1099 = vmatprep.mubr.f32.mxu1 %v2202_v23  ;;  %v943_v45 = vadd.f32 %v2202_v23, %v2200_v31 }
 0x20e   : > { %1100 = vmatmul.mubr.f32.gmra.mrb[28].mxu1 %v2200_v31 }
 0x20f   : > { %v2204_v8 = vpop.eup %2203  ;;  %944 = vadd.xlane.f32.xlu0 %v943_v45  ;;  %905 = vadd.xlane.f32.xlu1 %v2843_v26 }
 0x210   : > { %v2206_v46 = vpop.eup %2205 }
 0x211   : > { %1104 = vmatprep.mubr.f32.mxu1 %v2206_v46  ;;  %v946_v13 = vadd.f32 %v2206_v46, %v2204_v8 }
 0x212   : > { %1105 = vmatmul.mubr.f32.gmra.mrb[30].mxu1 %v2204_v8 }
 0x213   : > { %902 = vadd.xlane.f32.xlu0 %v2833_v14  ;;  %911 = vadd.xlane.f32.xlu1 %v2857_v36 }
 0x214   : > { %1235 = vmatprep.mubr.f32.mxu1 %v3059_v16 }
 0x217   : > { %908 = vadd.xlane.f32.xlu0 %v2853_v28  ;;  %947 = vadd.xlane.f32.xlu1 %v946_v13 }
 0x274   : > { %v915_v17 = vpop.xlane.xlu0 %914 }
 0x275   : > { %2207 = vrcp.f32 %v915_v17 }
 0x278   : > { %v918_v49 = vpop.xlane.xlu1 %917 }
 0x279   : > { %2209 = vrcp.f32 %v918_v49 }
 0x27c   : > { %v921_v14 = vpop.xlane.xlu0 %920 }
 0x27d   : > { %2211 = vrcp.f32 %v921_v14 }
 0x27f   : > { %v2208_v53 = vpop.eup %2207 }
 0x280   : > { %v924_v28 = vpop.xlane.xlu1 %923 }
 0x281   : > { %2213 = vrcp.f32 %v924_v28 }
 0x283   : > { %v2210_v38 = vpop.eup %2209 }
 0x284   : > { %v927_v61 = vpop.xlane.xlu0 %926 }
 0x285   : > { %2215 = vrcp.f32 %v927_v61 }
 0x287   : > { %v2212_v3 = vpop.eup %2211 }
 0x288   : > { %v930_v34 = vpop.xlane.xlu1 %929 }
 0x289   : > { %2217 = vrcp.f32 %v930_v34 }
 0x28b   : > { %v2214_v4 = vpop.eup %2213 }
 0x28c   : > { %v933_v1 = vpop.xlane.xlu0 %932 }
 0x28d   : > { %2219 = vrcp.f32 %v933_v1 }
 0x28f   : > { %v2216_v37 = vpop.eup %2215 }
 0x290   : > { %v936_v57 = vpop.xlane.xlu1 %935 }
 0x291   : > { %2221 = vrcp.f32 %v936_v57 }
 0x293   : > { %v2218_v40 = vpop.eup %2217 }
 0x294   : > { %v939_v54 = vpop.xlane.xlu0 %938 }
 0x295   : > { %2223 = vrcp.f32 %v939_v54  ;;  %v3062_v54 = vld [vmem:[#allocation7_spill] sm:$0xff] }
 0x297   : > { %v2220_v22 = vpop.eup %2219 }
 0x298   : > { %v942_v5 = vpop.xlane.xlu1 %941 }
 0x299   : > { %2225 = vrcp.f32 %v942_v5 }
 0x29b   : > { %v2222_v43 = vpop.eup %2221 }
 0x29c   : > { %v906_v62 = vpop.xlane.xlu1 %905  ;;  %v945_v42 = vpop.xlane.xlu0 %944 }
 0x29d   : > { %2227 = vrcp.f32 %v945_v42 }
 0x29f   : > { %v2224_v23 = vpop.eup %2223 }
 0x2a0   : > { %v912_v56 = vpop.xlane.xlu1 %911 }
 0x2a3   : > { %v2226_v13 = vpop.eup %2225 }
 0x2a4   : > { %v948_v31 = vpop.xlane.xlu1 %947 }
 0x2a5   : > { %2229 = vrcp.f32 %v948_v31  ;;  %v3078_v31 = vld [vmem:[#allocation17_spill] sm:$0xff] }
 0x2a7   : > { %v2228_v49 = vpop.eup %2227 }
 0x2a9   : > { %v2880_v47 = vpop.f32.mrb[0].mxu1 }
 0x2aa   : > { %v1033_v15 = vpop.f32.mrb[1].mxu1 }
 0x2ad   : > { %v2882_v48 = vpop.f32.mrb[2].mxu1 }
 0x2ae   : > { %v1038_v26 = vpop.f32.mrb[3].mxu1 }
 0x2af   : > { %v2230_v28 = vpop.eup %2229 }
 0x2b1   : > { %v2884_v24 = vpop.f32.mrb[4].mxu1 }
 0x2b2   : > { %v1043_v25 = vpop.f32.mrb[5].mxu1 }
 0x2b5   : > { %v2886_v36 = vpop.f32.mrb[6].mxu1 }
 0x2b6   : > { %v1048_v51 = vpop.f32.mrb[7].mxu1 }
 0x2b9   : > { %v1051_v9 = vpop.f32.mrb[8].mxu1 }
 0x2ba   : > { %v1114_v11 = vmul.f32 %v2208_v53, %v1051_v9  ;;  %v1053_v58 = vpop.f32.mrb[9].mxu1 }
 0x2bb   : > { %v903_v58 = vpop.xlane.xlu0 %902 }
 0x2bc   : > { %1272 = vrot.lane.b32.xlu0 %v1114_v11, %s2304_s23  ;;  %2231 = vrcp.f32 %v903_v58 }
 0x2bd   : > { %v1056_v41 = vpop.f32.mrb[10].mxu1  ;;  %2233 = vrcp.f32 %v906_v62  ;;  %v3063_v62 = vld [vmem:[#allocation6_spill] sm:$0xff] }
 0x2be   : > { %v1115_v50 = vmul.f32 %v2210_v38, %v1056_v41  ;;  %v1058_v0 = vpop.f32.mrb[11].mxu1 }
 0x2bf   : > { %v909_v61 = vpop.xlane.xlu0 %908 }
 0x2c0   : > { %1274 = vrot.lane.b32.xlu1 %v1115_v50, %s2304_s23  ;;  %2235 = vrcp.f32 %v909_v61 }
 0x2c1   : > { %v1061_v52 = vpop.f32.mrb[12].mxu1  ;;  %2237 = vrcp.f32 %v912_v56  ;;  %v3071_v56 = vld [vmem:[#allocation15_spill] sm:$0xff] }
 0x2c2   : > { %v1116_v59 = vmul.f32 %v2212_v3, %v1061_v52  ;;  %v1063_v55 = vpop.f32.mrb[13].mxu1 }
 0x2c4   : > { %1276 = vrot.lane.b32.xlu1 %v1116_v59, %s2304_s23 }
 0x2c5   : > { %v1066_v60 = vpop.f32.mrb[14].mxu1 }
 0x2c6   : > { %v1117_v33 = vmul.f32 %v2214_v4, %v1066_v60  ;;  %v1068_v35 = vpop.f32.mrb[15].mxu1  ;;  %v2232_v38 = vpop.eup %2231 }
 0x2c7   : > { %v1110_v41 = vmul.f32 %v2232_v38, %v2880_v47  ;;  %v2234_v34 = vpop.eup %2233 }
 0x2c8   : > { %1278 = vrot.lane.b32.xlu1 %v1117_v33, %s2304_s23  ;;  %v1111_v50 = vmul.f32 %v2234_v34, %v2882_v48  ;;  %v245_v34 = vld [vmem:[%s3012_s3] sm:$0xf]  ;;  %s2243_s23 = sshll.u32 %s2308_s19, 4  ;;  %s2244_s23 = int_to_ptr.vmem [resolvable:$false] %s2243_s23 }
 0x2c9   : > { %v1071_v18 = vpop.f32.mrb[16].mxu1  ;;  %p2246_p0 = scmp.lt.s32.totalorder %s2969_s11, %s2244_s23 }
 0x2ca   : > { %v1118_v19 = vmul.f32 %v2216_v37, %v1071_v18  ;;  %v1073_v39 = vpop.f32.mrb[17].mxu1  ;;  %v2236_v0 = vpop.eup %2235  ;;  %v3060_v18 = vpack.c.bf16 %v2656_v2, %v2652_v63 }
 0x2cb   : > { %v1112_v3 = vmul.f32 %v2236_v0, %v2884_v24  ;;  %v2238_v52 = vpop.eup %2237 }
 0x2cc   : > { %1429 = vrot.lane.b32.xlu0 %v1118_v19, %s2305_s27  ;;  %v1113_v57 = vmul.f32 %v2238_v52, %v2886_v36  ;;  %v3061_v19 = vpack.c.bf16 %v2672_v10, %v2666_v7  ;;  %v3068_v10 = vld [vmem:[#allocation10_spill] sm:$0xff] }
 0x2cd   : > { %v1076_v12 = vpop.f32.mrb[18].mxu1 }
 0x2ce   : > { %v1119_v27 = vmul.f32 %v2218_v40, %v1076_v12  ;;  %v1078_v29 = vpop.f32.mrb[19].mxu1  ;;  %v3064_v40 = vpack.c.bf16 %v3062_v54, %v3063_v62  ;;  %v3065_v12 = vld [vmem:[#allocation11_spill] sm:$0xff] }
 0x2d0   : > { %1431 = vrot.lane.b32.xlu1 %v1119_v27, %s2305_s27  ;;  %v3066_v27 = vld [vmem:[#allocation9_spill] sm:$0xff] }
 0x2d1   : > { %v1081_v20 = vpop.f32.mrb[20].mxu1  ;;  %v3067_v29 = vpack.c.bf16 %v3065_v12, %v3066_v27 }
 0x2d2   : > { %v1120_v30 = vmul.f32 %v2220_v22, %v1081_v20  ;;  %v1083_v44 = vpop.f32.mrb[21].mxu1  ;;  %v3069_v22 = vld [vmem:[#allocation8_spill] sm:$0xff] }
 0x2d3   : > { %v3070_v20 = vpack.c.bf16 %v3068_v10, %v3069_v22 }
 0x2d4   : > { %1433 = vrot.lane.b32.xlu0 %v1120_v30, %s2305_s27  ;;  %v3072_v30 = vld [vmem:[#allocation13_spill] sm:$0xff] }
 0x2d5   : > { %v1086_v6 = vpop.f32.mrb[22].mxu1  ;;  %v3073_v44 = vpack.c.bf16 %v3071_v56, %v3072_v30 }
 0x2d6   : > { %v1121_v21 = vmul.f32 %v2222_v43, %v1086_v6  ;;  %v1088_v32 = vpop.f32.mrb[23].mxu1  ;;  %v3074_v43 = vld [vmem:[#allocation14_spill] sm:$0xff]  ;;  %v3075_v6 = vld [vmem:[#allocation12_spill] sm:$0xff] }
 0x2d7   : > { %v3077_v32 = vld [vmem:[#allocation19_spill] sm:$0xff] }
 0x2d8   : > { %1435 = vrot.lane.b32.xlu1 %v1121_v21, %s2305_s27  ;;  %v3076_v21 = vpack.c.bf16 %v3074_v43, %v3075_v6  ;;  %s2245_s27 = scalar_lea.vmem %s2244_s23, 256 }
 0x2d9   : > { %v1091_v45 = vpop.f32.mrb[24].mxu1  ;;  %p2247_p1 = scmp.lt.s32.totalorder %s2245_s27, %s2239_s22 }
 0x2da   : > { %v1122_v8 = vmul.f32 %v2224_v23, %v1091_v45  ;;  %v1093_v46 = vpop.f32.mrb[25].mxu1  ;;  %v3079_v23 = vpack.c.bf16 %v3077_v32, %v3078_v31 }
 0x2db   : > { %p2248_p2 = por %p2247_p1, %p2246_p0 }
 0x2dc   : > { %1586 = vrot.lane.b32.xlu0 %v1122_v8, %s2306_s28 }
 0x2dd   : > { %v1096_v15 = vpop.f32.mrb[26].mxu1  ;;  %p2249_p3 = pnand %p2248_p2, %p2242_p13 }
 0x2de   : > { %v1123_v17 = vmul.f32 %v2226_v13, %v1096_v15  ;;  %v1098_v26 = vpop.f32.mrb[27].mxu1  ;;  %v3080_v13 = vld [vmem:[#allocation18_spill] sm:$0xff]  ;;  %v3081_v15 = vld [vmem:[#allocation16_spill] sm:$0xff] }
 0x2df   : > { %v3083_v26 = vld [vmem:[#allocation23_spill] sm:$0xff] }
 0x2e0   : > { %1588 = vrot.lane.b32.xlu1 %v1123_v17, %s2306_s28  ;;  %v3082_v17 = vpack.c.bf16 %v3080_v13, %v3081_v15 }
 0x2e1   : > { %v1101_v25 = vpop.f32.mrb[28].mxu1 }
 0x2e2   : > { %v1124_v14 = vmul.f32 %v2228_v49, %v1101_v25  ;;  %v1103_v51 = vpop.f32.mrb[29].mxu1  ;;  %v3084_v49 = vld [vmem:[#allocation21_spill] sm:$0xff] }
 0x2e3   : > { %v3085_v25 = vpack.c.bf16 %v3083_v26, %v3084_v49  ;;  %v3086_v51 = vld [vmem:[#allocation22_spill] sm:$0xff] }
 0x2e4   : > { %1590 = vrot.lane.b32.xlu0 %v1124_v14, %s2306_s28 }
 0x2e5   : > { %v1106_v53 = vpop.f32.mrb[30].mxu1 }
 0x2e6   : > { %v1125_v9 = vmul.f32 %v2230_v28, %v1106_v53  ;;  %v1108_v11 = vpop.f32.mrb[31].mxu1  ;;  %v3087_v28 = vld [vmem:[#allocation20_spill] sm:$0xff] }
 0x2e7   : > { %v3088_v53 = vpack.c.bf16 %v3086_v51, %v3087_v28 }
 0x2e8   : > { %1592 = vrot.lane.b32.xlu1 %v1125_v9, %s2306_s28 }
 0x302   : > { %1126 = vxpose.xlu0.b32.start [1/4] (short) (narrow) %v1110_v41, 32 }
 0x306   : > { %1127 = vxpose.xlu0.b32.cont [2/4] (short) (narrow) %v1111_v50, 32  ;;  %v2307_v50 = vmov 0  }
 0x30a   : > { %1128 = vxpose.xlu0.b32.cont [3/4] (short) (narrow) %v1112_v3, 32 }
 0x30e   : > { %1129 = vxpose.xlu0.b32.end [4/4] (short) (narrow) %v1113_v57, 32 }
 0x32e   : > { %v1273_v59 = vpop.permute.xlu0 %1272 }
 0x32f   : > { %1284 = vxpose.xlu1.b32.start [1/4] (short) (narrow) %v1273_v59, 32 }
 0x332   : > { %v1275_v55 = vpop.permute.xlu1 %1274 }
 0x333   : > { %1285 = vxpose.xlu1.b32.cont [2/4] (short) (narrow) %v1275_v55, 32 }
 0x336   : > { %v1277_v1 = vpop.permute.xlu1 %1276 }
 0x337   : > { %1286 = vxpose.xlu1.b32.cont [3/4] (short) (narrow) %v1277_v1, 32 }
 0x33a   : > { %v1279_v47 = vpop.permute.xlu1 %1278 }
 0x33b   : > { %1287 = vxpose.xlu1.b32.end [4/4] (short) (narrow) %v1279_v47, 32 }
 0x33e   : > { %v1430_v4 = vpop.permute.xlu0 %1429 }
 0x33f   : > { %1441 = vxpose.xlu0.b32.start [1/4] (short) (narrow) %v1430_v4, 32 }
 0x342   : > { %v1432_v48 = vpop.permute.xlu1 %1431 }
 0x343   : > { %1442 = vxpose.xlu0.b32.cont [2/4] (short) (narrow) %v1432_v48, 32 }
 0x346   : > { %v1434_v60 = vpop.permute.xlu0 %1433 }
 0x347   : > { %1443 = vxpose.xlu0.b32.cont [3/4] (short) (narrow) %v1434_v60, 32 }
 0x34a   : > { %v1436_v24 = vpop.permute.xlu1 %1435 }
 0x34b   : > { %1444 = vxpose.xlu0.b32.end [4/4] (short) (narrow) %v1436_v24, 32 }
 0x34e   : > { %v1587_v5 = vpop.permute.xlu0 %1586 }
 0x34f   : > { %1598 = vxpose.xlu1.b32.start [1/4] (short) (narrow) %v1587_v5, 32 }
 0x352   : > { %v1589_v36 = vpop.permute.xlu1 %1588 }
 0x353   : > { %1599 = vxpose.xlu1.b32.cont [2/4] (short) (narrow) %v1589_v36, 32 }
 0x356   : > { %v1591_v33 = vpop.permute.xlu0 %1590 }
 0x357   : > { %1600 = vxpose.xlu1.b32.cont [3/4] (short) (narrow) %v1591_v33, 32 }
 0x35a   : > { %v1593_v35 = vpop.permute.xlu1 %1592 }
 0x35b   : > { %1601 = vxpose.xlu1.b32.end [4/4] (short) (narrow) %v1593_v35, 32 }
 0x374   : > { %2141 = vset.pattern.permute.xlu0 %v2307_v50 }
 0x375   : > { %248 = vperm.xlu0 %2141, %v245_v34  }
 0x382   : > { %v1142_v37 = vpop.trf.xlu0 }
 0x383   : > { %1978 = vmatmul.mubr.msk.f32.vlgmr.msra.gmra.mrb[32].mxu1 %vm1158_vm2, %v1142_v37 }
 0x384   : > { %2044 = vmatpush1.bf16.msra.mxu1 %v3060_v18  ;;  %1241 = vmatprep.mubr.f32.mxu1 %v3059_v16 }
 0x385   : > { %2046 = vmatprep.subr.bf16.mxu1 %v3061_v19 }
 0x386   : > { %v1143_v39 = vpop.trf.xlu0 }
 0x387   : > { %1979 = vmatmul.mubr.msk.f32.gmra.mrb[34].mxu1 %vm1158_vm2, %v1143_v39 }
 0x388   : > { %2048 = vmatpush1.bf16.msra.mxu1 %v3064_v40  ;;  %1247 = vmatprep.mubr.f32.mxu1 %v3059_v16 }
 0x389   : > { %2050 = vmatprep.subr.bf16.mxu1 %v3067_v29 }
 0x38a   : > { %v1144_v63 = vpop.trf.xlu0 }
 0x38b   : > { %1980 = vmatmul.mubr.msk.f32.gmra.mrb[36].mxu1 %vm1158_vm2, %v1144_v63 }
 0x38c   : > { %1253 = vmatprep.mubr.f32.mxu1 %v3059_v16 }
 0x38e   : > { %v1145_v2 = vpop.trf.xlu0 }
 0x38f   : > { %1981 = vmatmul.mubr.msk.f32.gmra.mrb[38].mxu1 %vm1158_vm2, %v1145_v2 }
 0x390   : > { %1392 = vmatprep.mubr.f32.mxu1 %v3059_v16 }
 0x3af   : > { %v1300_v7 = vpop.trf.xlu1 }
 0x3b0   : > { %1982 = vmatmul.mubr.msk.f32.vlgmr.msra.gmra.mrb[40].mxu1 %vm1158_vm2, %v1300_v7 }
 0x3b1   : > { %2052 = vmatpush1.bf16.msra.mxu1 %v3070_v20  ;;  %1398 = vmatprep.mubr.f32.mxu1 %v3059_v16 }
 0x3b2   : > { %2054 = vmatprep.subr.bf16.mxu1 %v3073_v44 }
 0x3b3   : > { %v1301_v42 = vpop.trf.xlu1 }
 0x3b4   : > { %1983 = vmatmul.mubr.msk.f32.gmra.mrb[42].mxu1 %vm1158_vm2, %v1301_v42 }
 0x3b5   : > { %2056 = vmatpush1.bf16.msra.mxu1 %v3076_v21  ;;  %1404 = vmatprep.mubr.f32.mxu1 %v3059_v16 }
 0x3b6   : > { %2058 = vmatprep.subr.bf16.mxu1 %v3079_v23 }
 0x3b7   : > { %v1302_v45 = vpop.trf.xlu1 }
 0x3b8   : > { %1984 = vmatmul.mubr.msk.f32.gmra.mrb[44].mxu1 %vm1158_vm2, %v1302_v45 }
 0x3b9   : > { %1410 = vmatprep.mubr.f32.mxu1 %v3059_v16 }
 0x3bb   : > { %v1303_v8 = vpop.trf.xlu1 }
 0x3bc   : > { %1985 = vmatmul.mubr.msk.f32.gmra.mrb[46].mxu1 %vm1158_vm2, %v1303_v8 }
 0x3bd   : > { %1549 = vmatprep.mubr.f32.mxu1 %v3059_v16 }
 0x3bf   : > { %v1457_v46 = vpop.trf.xlu0 }
 0x3c0   : > { %1986 = vmatmul.mubr.msk.f32.vlgmr.msra.gmra.mrb[48].mxu1 %vm1158_vm2, %v1457_v46 }
 0x3c1   : > { %2060 = vmatpush1.bf16.msra.mxu1 %v3082_v17  ;;  %1555 = vmatprep.mubr.f32.mxu1 %v3059_v16  ;;  %v244_v17 = vld [vmem:[%s3011_s2] sm:$0xf] }
 0x3c2   : > { %2062 = vmatprep.subr.bf16.mxu1 %v3085_v25 }
 0x3c3   : > { %v1458_v14 = vpop.trf.xlu0 }
 0x3c4   : > { %1987 = vmatmul.mubr.msk.f32.gmra.mrb[50].mxu1 %vm1158_vm2, %v1458_v14 }
 0x3c5   : > { %2064 = vmatpush1.bf16.msra.mxu1 %v3088_v53  ;;  %1561 = vmatprep.mubr.f32.mxu1 %v3059_v16 }
 0x3c7   : > { %v1459_v9 = vpop.trf.xlu0 }
 0x3c8   : > { %1988 = vmatmul.mubr.msk.f32.gmra.mrb[52].mxu1 %vm1158_vm2, %v1459_v9 }
 0x3c9   : > { %1567 = vmatprep.mubr.f32.mxu1 %v3059_v16 }
 0x3cb   : > { %v1460_v11 = vpop.trf.xlu0 }
 0x3cc   : > { %1989 = vmatmul.mubr.msk.f32.gmra.mrb[54].mxu1 %vm1158_vm2, %v1460_v11 }
 0x3cd   : > { %1706 = vmatprep.mubr.f32.mxu1 %v3059_v16 }
 0x3cf   : > { %v1614_v58 = vpop.trf.xlu1 }
 0x3d0   : > { %1990 = vmatmul.mubr.msk.f32.vlgmr.msra.gmra.mrb[56].mxu1 %vm1158_vm2, %v1614_v58 }
 0x3d1   : > { %1712 = vmatprep.mubr.f32.mxu1 %v3059_v16 }
 0x3d3   : > { %v1615_v61 = vpop.trf.xlu1 }
 0x3d4   : > { %1991 = vmatmul.mubr.msk.f32.gmra.mrb[58].mxu1 %vm1158_vm2, %v1615_v61 }
 0x3d5   : > { %1718 = vmatprep.mubr.f32.mxu1 %v3059_v16 }
 0x3d7   : > { %v1616_v38 = vpop.trf.xlu1 }
 0x3d8   : > { %1992 = vmatmul.mubr.msk.f32.gmra.mrb[60].mxu1 %vm1158_vm2, %v1616_v38 }
 0x3d9   : > { %1724 = vmatprep.mubr.f32.mxu1 %v3059_v16 }
 0x3db   : > { %v1617_v41 = vpop.trf.xlu1 }
 0x3dc   : > { %1993 = vmatmul.mubr.msk.f32.gmra.mrb[62].mxu1 %vm1158_vm2, %v1617_v41 }
 0x3f4   : > { %v249_v26 = vpop.permute.xlu0 %248 }
 0x456   : > { %v1237_v0 = vpop.f32.mrb[32].mxu1 }
 0x457   : > { %v1239_v3 = vpop.f32.mrb[33].mxu1 }
 0x45a   : > { %v1243_v52 = vpop.f32.mrb[34].mxu1 }
 0x45b   : > { %v2067_v57 = vpack.c.bf16 %v1243_v52, %v1237_v0  ;;  %v1245_v59 = vpop.f32.mrb[35].mxu1 }
 0x45c   : > { %v2065_v55 = vpack.c.bf16 %v1245_v59, %v1239_v3 }
 0x45e   : > { %2066 = vmatprep.subr.bf16.mxu0 %v2065_v55  ;;  %v1249_v1 = vpop.f32.mrb[36].mxu1 }
 0x45f   : > { %2068 = vmatpush1.bf16.msra.mxu0 %v2067_v57  ;;  %v1251_v16 = vpop.f32.mrb[37].mxu1 }
 0x462   : > { %v1255_v47 = vpop.f32.mrb[38].mxu1 }
 0x463   : > { %v2071_v4 = vpack.c.bf16 %v1255_v47, %v1249_v1  ;;  %v1257_v48 = vpop.f32.mrb[39].mxu1 }
 0x464   : > { %v2069_v60 = vpack.c.bf16 %v1257_v48, %v1251_v16 }
 0x466   : > { %2070 = vmatprep.subr.bf16.mxu0 %v2069_v60 }
 0x467   : > { %2072 = vmatpush1.bf16.msra.mxu0 %v2071_v4 }
 0x483   : > { %v1394_v24 = vpop.f32.mrb[40].mxu1 }
 0x484   : > { %v1396_v5 = vpop.f32.mrb[41].mxu1 }
 0x487   : > { %v1400_v36 = vpop.f32.mrb[42].mxu1 }
 0x488   : > { %v2075_v33 = vpack.c.bf16 %v1400_v36, %v1394_v24  ;;  %v1402_v35 = vpop.f32.mrb[43].mxu1 }
 0x489   : > { %v2073_v37 = vpack.c.bf16 %v1402_v35, %v1396_v5 }
 0x48b   : > { %2074 = vmatprep.subr.bf16.mxu0 %v2073_v37  ;;  %v1406_v18 = vpop.f32.mrb[44].mxu1 }
 0x48c   : > { %2076 = vmatpush1.bf16.msra.mxu0 %v2075_v33  ;;  %v1408_v19 = vpop.f32.mrb[45].mxu1 }
 0x48f   : > { %v1412_v39 = vpop.f32.mrb[46].mxu1 }
 0x490   : > { %v2079_v54 = vpack.c.bf16 %v1412_v39, %v1406_v18  ;;  %v1414_v62 = vpop.f32.mrb[47].mxu1 }
 0x491   : > { %v2077_v40 = vpack.c.bf16 %v1414_v62, %v1408_v19 }
 0x493   : > { %2078 = vmatprep.subr.bf16.mxu0 %v2077_v40  ;;  %v1551_v12 = vpop.f32.mrb[48].mxu1 }
 0x494   : > { %2080 = vmatpush1.bf16.msra.mxu0 %v2079_v54  ;;  %v1553_v27 = vpop.f32.mrb[49].mxu1 }
 0x497   : > { %v1557_v29 = vpop.f32.mrb[50].mxu1 }
 0x498   : > { %v2083_v63 = vpack.c.bf16 %v1557_v29, %v1551_v12  ;;  %v1559_v2 = vpop.f32.mrb[51].mxu1 }
 0x499   : > { %v2081_v7 = vpack.c.bf16 %v1559_v2, %v1553_v27 }
 0x49b   : > { %2082 = vmatprep.subr.bf16.mxu0 %v2081_v7  ;;  %v1563_v10 = vpop.f32.mrb[52].mxu1 }
 0x49c   : > { %2084 = vmatpush1.bf16.msra.mxu0 %v2083_v63  ;;  %v1565_v22 = vpop.f32.mrb[53].mxu1 }
 0x49f   : > { %v1569_v20 = vpop.f32.mrb[54].mxu1 }
 0x4a0   : > { %v2087_v56 = vpack.c.bf16 %v1569_v20, %v1563_v10  ;;  %v1571_v30 = vpop.f32.mrb[55].mxu1 }
 0x4a1   : > { %v2085_v44 = vpack.c.bf16 %v1571_v30, %v1565_v22 }
 0x4a3   : > { %2086 = vmatprep.subr.bf16.mxu0 %v2085_v44  ;;  %v1708_v42 = vpop.f32.mrb[56].mxu1 }
 0x4a4   : > { %2088 = vmatpush1.bf16.msra.mxu0 %v2087_v56  ;;  %v1710_v43 = vpop.f32.mrb[57].mxu1 }
 0x4a7   : > { %v1714_v6 = vpop.f32.mrb[58].mxu1 }
 0x4a8   : > { %v2091_v21 = vpack.c.bf16 %v1714_v6, %v1708_v42  ;;  %v1716_v32 = vpop.f32.mrb[59].mxu1 }
 0x4a9   : > { %v2089_v31 = vpack.c.bf16 %v1716_v32, %v1710_v43 }
 0x4ab   : > { %2090 = vmatprep.subr.bf16.mxu0 %v2089_v31  ;;  %v1720_v23 = vpop.f32.mrb[60].mxu1 }
 0x4ac   : > { %2092 = vmatpush1.bf16.msra.mxu0 %v2091_v21  ;;  %v1722_v45 = vpop.f32.mrb[61].mxu1 }
 0x4af   : > { %v1726_v8 = vpop.f32.mrb[62].mxu1 }
 0x4b0   : > { %v2095_v46 = vpack.c.bf16 %v1726_v8, %v1720_v23  ;;  %v1728_v13 = vpop.f32.mrb[63].mxu1 }
 0x4b1   : > { %v2093_v15 = vpack.c.bf16 %v1728_v13, %v1722_v45 }
 0x4b3   : > { %2094 = vmatprep.subr.bf16.mxu0 %v2093_v15 }
 0x4b4   : > { %2096 = vmatpush1.bf16.msra.mxu0 %v2095_v46 }
 0x4b7   : > { %1836 = vmatmul.mubr.f32.vlgmr.msra.gmra.mrb[96].mxu0 %v244_v17 }
 0x58a   : > { %v1837_v49 = vpop.f32.mrb[96].mxu0 }
 0x58b   : > { %v1838_v25 = vadd.f32 %v1837_v49, %v249_v26  ;;  %v1839_v14 = vpop.f32.mrb[97].mxu0 }
 0x58c   : > { %v1840_v51 = vadd.f32 %v1839_v14, %v249_v26 }
 0x58e   : > { %v1844_v28 = vcombine.low %v1838_v25, %v1840_v51 }
 0x590   : > { %1846 = vst [vmem:[%s190_s10] sm:$0xff] %v1844_v28 }
 0x591   : > { %2252 = shalt.err (!%p2249_p3)
}
 0x592   : > { %s2253_s28 = scalar_lea.hbm %s2967_s14, 128  ;;  %s2257_s5 = scalar_lea.hbm %s3013_s4, 256 }
 0x593   : > { %p2254_p4 = scmp.ne.s32.totalorder %s2967_s14, %s2253_s28  ;;  %p2258_p9 = scmp.lt.u32.totalorder %s2967_s14, %s3013_s4 }
 0x594   : > { %p2259_p10 = scmp.lt.u32.totalorder %s2257_s5, %s2253_s28  ;;  %p2261_p12 = scmp.lt.u32.totalorder %s2253_s28, %s2967_s14 }
 0x595   : > { %p2255_p7 = pnand %p2254_p4, %p2372_p5 }
 0x596   : > { %p2260_p11 = por %p2259_p10, %p2258_p9 }
 0x597   : > { %p2256_p8 = pneg %p2255_p7 }
 0x598   : > { %p2262_p13 = por %p2261_p12, %p2260_p11 }
 0x59a   : > { %p2263_p0 = pnand %p2262_p13, %p2256_p8 }
 0x59c   : > { %2266 = shalt.err (!%p2263_p0)
}
 0x59d   : > { %2097 = dma.vmem_to_hbm [thread:$0]  (%p2372_p5), %s2969_s11, 128, %s2967_s14, %s1848_s20  }
 0x59e PF: > { %p2103_p1 = scmp.ge.s32.totalorder %s2301_s18, 2  ;;  %s1874_s8 = sand.u32 1, %s2289_s15  }
 0x59f   : > { %s1875_s9 = scalar_lea.sflag [#allocation4], %s1874_s8 }
 0x5a0   : > { %p2100_p2 = pnand %p2103_p1, %p2376_p6 }
 0x5a2   : > { %2284 = dma.done.wait (!%p2100_p2), %s1875_s9, 128  }
 0x5a3   : > { %2286 = vsyncadd (!%p2100_p2), %s1875_s9, 4294967168  ;;  %p14_p3 = scmp.ge.s32.totalorder %s2359_s21, 4   ;;  %s3089_s15 = smov %s2293_s16 }
 0x5a4   : > { %s3090_s16 = smov %s2297_s17  ;;  %s3091_s17 = smov %s2370_s24 }
 0x5a5   : > { %s3092_s18 = smov %s2359_s21  ;;  %16 = sbr.rel (!%p14_p3) target bundleno = 3 (0x3), region = 71 }
 0x5ac   :  { %1880 = vsyncpa [#allocation4], 1 }
 0x5ad   :  { %1882 = vsyncpa [#allocation4 + $0x1], 1 }

</bundles_post_ra>
